<compile_context>
chip_gen: v5e
topology: v5e:2x2
jax: 0.10.0
libtpu: 0.0.40
codegen_flags: <defaults>
</compile_context>

<pallas_src>
import jax
import jax.numpy as jnp
from jax import lax
from jax.experimental import pallas as pl
from jax.experimental.pallas import tpu as pltpu

EPS = 1e-5


# ----------------------------- in-kernel helpers ----------------------------

def _pad_hw1(v):
    """Zero-pad H and W (dims 1, 2) by one on each side, as value ops."""
    tn, h, w, c = v.shape
    zr = jnp.zeros((tn, 1, w, c), v.dtype)
    v = jnp.concatenate([zr, v, zr], axis=1)
    zc = jnp.zeros((tn, h + 2, 1, c), v.dtype)
    return jnp.concatenate([zc, v, zc], axis=2)


def _tap(xp, dy, dx, stride, ho, wo):
    """Tap (dy, dx) of a padded (tn, h+2, w+2, c) value for a 3x3 conv."""
    if stride == 1:
        return xp[:, dy:dy + ho, dx:dx + wo, :]
    # TODO(synk): use strided (pl.ds stride=) loads instead of an in-vreg
    # downselect for stride>1 blocks.
    return xp[:, dy:dy + (ho - 1) * stride + 1:stride,
              dx:dx + (wo - 1) * stride + 1:stride, :]


def _tile_stats(y, m):
    """(2, C) slab [sum, centred sum-of-squares] -- exact two-pass per tile."""
    s = jnp.sum(y, axis=0, keepdims=True)
    d = y - s * (1.0 / m)
    return jnp.concatenate([s, jnp.sum(d * d, axis=0, keepdims=True)], axis=0)


def _conv3x3(xp, w_ref, m, c_in, cout, stride, ho, wo):
    """3x3 conv as 3 dy-group matmuls (K=3*c_in), bf16 MXU, f32 accumulation."""
    acc = jnp.zeros((m, cout), jnp.float32)
    for dy in range(3):
        im = jnp.concatenate(
            [_tap(xp, dy, dx, stride, ho, wo).reshape(m, c_in) for dx in range(3)],
            axis=1).astype(jnp.bfloat16)
        acc = acc + jnp.dot(im, w_ref[dy * 3 * c_in:(dy + 1) * 3 * c_in, :],
                            preferred_element_type=jnp.float32)
    return acc


# ------------------------------- kernels -------------------------------------

def _make_conv1_kernel(tn, h, w, cin, cout, stride, has_shortcut):
    ho = (h - 1) // stride + 1
    wo = (w - 1) // stride + 1
    m = tn * ho * wo

    def kernel(*refs):
        if has_shortcut:
            x_ref, w1_ref, ws_ref, y1_ref, st1_ref, ys_ref, sts_ref = refs
        else:
            x_ref, w1_ref, y1_ref, st1_ref = refs

        xp = _pad_hw1(x_ref[...])          # zero-padding fused into the kernel

        if has_shortcut:
            # 1x1 projection reuses the conv1 centre tap; computed first so it
            # is not live across the conv1 accumulation loop.
            xs = _tap(xp, 1, 1, stride, ho, wo).reshape(m, cin).astype(jnp.bfloat16)
            ys = jnp.dot(xs, ws_ref[...], preferred_element_type=jnp.float32)
            sts_ref[0, :, :] = _tile_stats(ys, m)
            ys_ref[...] = ys.reshape(tn, ho, wo, cout)

        y1 = _conv3x3(xp, w1_ref, m, cin, cout, stride, ho, wo)
        st1_ref[0, :, :] = _tile_stats(y1, m)
        y1_ref[...] = y1.reshape(tn, ho, wo, cout)

    return kernel


def _make_conv2_kernel(tn, ho, wo, cout):
    m = tn * ho * wo

    def kernel(y1_ref, sc1_ref, sh1_ref, w2_ref, y2_ref, st2_ref):
        sc = sc1_ref[...].reshape(1, 1, 1, cout)
        sh = sh1_ref[...].reshape(1, 1, 1, cout)
        z = jnp.maximum(y1_ref[...] * sc + sh, 0.0)     # BN1 affine + ReLU
        y2 = _conv3x3(_pad_hw1(z), w2_ref, m, cout, cout, 1, ho, wo)
        st2_ref[0, :, :] = _tile_stats(y2, m)
        y2_ref[...] = y2.reshape(tn, ho, wo, cout)

    return kernel


def _make_finalize_kernel(has_shortcut):
    # Pure lane-dense elementwise kernel over (rows, Wo*Cout) slabs.
    def kernel(*refs):
        if has_shortcut:
            y2_ref, sc2_ref, sh2_ref, ys_ref, scs_ref, shs_ref, out_ref = refs
            short = ys_ref[...] * scs_ref[...] + shs_ref[...]
        else:
            y2_ref, sc2_ref, sh2_ref, x_ref, out_ref = refs
            short = x_ref[...]
        out_ref[...] = jnp.maximum(
            y2_ref[...] * sc2_ref[...] + sh2_ref[...] + short, 0.0)
    return kernel


# ------------------------------- wrapper -------------------------------------

def _combine_bn_stats(stats, m_tile, m_total, gamma, beta):
    """Exact combination of per-tile (sum, centred sumsq) -> BN scale/shift."""
    sums, css = stats[:, 0, :], stats[:, 1, :]
    mean = jnp.sum(sums, axis=0) / m_total
    mean_t = sums / m_tile
    var = (jnp.sum(css, axis=0)
           + m_tile * jnp.sum((mean_t - mean[None, :]) ** 2, axis=0)) / m_total
    scale = gamma * lax.rsqrt(var + EPS)
    shift = beta - mean * scale
    return (scale.reshape(1, -1).astype(jnp.float32),
            shift.reshape(1, -1).astype(jnp.float32))


def basic_block_forward(x_nchw, params, stride=1, tile_n=1):
    """BasicBlock forward. x_nchw: (N, Cin, H, W) f32 -> (N, Cout, Ho, Wo)."""
    x = jnp.transpose(x_nchw, (0, 2, 3, 1)).astype(jnp.float32)   # NHWC
    n, h, w, cin = x.shape
    cout = params["w1"].shape[-1]
    ho = (h - 1) // stride + 1
    wo = (w - 1) // stride + 1
    has_shortcut = (stride != 1) or (cin != cout)
    assert n % tile_n == 0
    nt = n // tile_n                     # batch tiles == grid steps
    m_tile = tile_n * ho * wo
    m_total = n * ho * wo

    w1 = params["w1"].reshape(9 * cin, cout).astype(jnp.bfloat16)
    w2 = params["w2"].reshape(9 * cout, cout).astype(jnp.bfloat16)

    cp = pltpu.CompilerParams(dimension_semantics=("parallel",),
                              vmem_limit_bytes=32 * 1024 * 1024)

    def batch_spec(shape):
        nd = len(shape)
        return pl.BlockSpec((tile_n,) + tuple(shape[1:]),
                            lambda i, _nd=nd: (i,) + (0,) * (_nd - 1))

    def resident_spec(a):                # constant index_map -> stays in VMEM
        nd = a.ndim
        return pl.BlockSpec(a.shape, lambda i, _nd=nd: (0,) * _nd)

    stats_spec = pl.BlockSpec((1, 2, cout), lambda i: (i, 0, 0))
    stats_shape = jax.ShapeDtypeStruct((nt, 2, cout), jnp.float32)
    act_shape = jax.ShapeDtypeStruct((n, ho, wo, cout), jnp.float32)
    act_spec = batch_spec((n, ho, wo, cout))

    # ---- phase 1: conv1 (+ 1x1 projection shortcut) + per-tile BN stats ----
    k1 = _make_conv1_kernel(tile_n, h, w, cin, cout, stride, has_shortcut)
    args1 = [x, w1]
    in_specs1 = [batch_spec(x.shape), resident_spec(w1)]
    out_shape1 = [act_shape, stats_shape]
    out_specs1 = [act_spec, stats_spec]
    if has_shortcut:
        ws = params["ws"].reshape(cin, cout).astype(jnp.bfloat16)
        args1 += [ws]
        in_specs1 += [resident_spec(ws)]
        out_shape1 += [act_shape, stats_shape]
        out_specs1 += [act_spec, stats_spec]
    out1 = pl.pallas_call(
        k1, out_shape=tuple(out_shape1), grid=(nt,),
        in_specs=in_specs1, out_specs=tuple(out_specs1),
        compiler_params=cp)(*args1)
    if has_shortcut:
        y1, st1, ys, sts = out1
    else:
        y1, st1 = out1

    sc1, sh1 = _combine_bn_stats(st1, m_tile, m_total, params["g1"], params["b1"])

    # ---- phase 2: BN1 affine + ReLU + conv2 + per-tile BN2 stats -----------
    k2 = _make_conv2_kernel(tile_n, ho, wo, cout)
    y2, st2 = pl.pallas_call(
        k2, out_shape=(act_shape, stats_shape), grid=(nt,),
        in_specs=[act_spec, resident_spec(sc1), resident_spec(sh1),
                  resident_spec(w2)],
        out_specs=(act_spec, stats_spec),
        compiler_params=cp)(y1, sc1, sh1, w2)

    sc2, sh2 = _combine_bn_stats(st2, m_tile, m_total, params["g2"], params["b2"])

    # ---- phase 3: lane-dense finalize (BN2 affine + shortcut + add + ReLU) -
    # Present everything as (N*Ho, Wo*Cout) slabs: unmasked, full-lane stores.
    def lane_dense(a4):
        return a4.reshape(n * ho, wo * cout)

    def tile_affine(v):                  # per-channel -> per-lane (1, Wo*Cout)
        return jnp.tile(v.reshape(1, cout), (1, wo))

    row_spec = pl.BlockSpec((tile_n * ho, wo * cout), lambda i: (i, 0))
    out2d_shape = jax.ShapeDtypeStruct((n * ho, wo * cout), jnp.float32)
    k3 = _make_finalize_kernel(has_shortcut)

    if has_shortcut:
        scs, shs = _combine_bn_stats(sts, m_tile, m_total,
                                     params["gs"], params["bs"])
        args3 = [lane_dense(y2), tile_affine(sc2), tile_affine(sh2),
                 lane_dense(ys), tile_affine(scs), tile_affine(shs)]
        in_specs3 = [row_spec, resident_spec(args3[1]), resident_spec(args3[2]),
                     row_spec, resident_spec(args3[4]), resident_spec(args3[5])]
    else:
        args3 = [lane_dense(y2), tile_affine(sc2), tile_affine(sh2),
                 lane_dense(x)]
        in_specs3 = [row_spec, resident_spec(args3[1]), resident_spec(args3[2]),
                     row_spec]

    out2d = pl.pallas_call(
        k3, out_shape=out2d_shape, grid=(nt,),
        in_specs=in_specs3, out_specs=row_spec,
        compiler_params=cp)(*args3)

    out = out2d.reshape(n, ho, wo, cout)
    return jnp.transpose(out, (0, 3, 1, 2))                       # NCHW


# ---------------------------- params & reference -----------------------------

def init_params(key, in_planes, planes, stride):
    ks = jax.random.split(key, 9)
    p = {
        "w1": 0.1 * jax.random.normal(ks[0], (3, 3, in_planes, planes), jnp.float32),
        "g1": 1.0 + 0.1 * jax.random.normal(ks[1], (planes,), jnp.float32),
        "b1": 0.1 * jax.random.normal(ks[2], (planes,), jnp.float32),
        "w2": 0.1 * jax.random.normal(ks[3], (3, 3, planes, planes), jnp.float32),
        "g2": 1.0 + 0.1 * jax.random.normal(ks[4], (planes,), jnp.float32),
        "b2": 0.1 * jax.random.normal(ks[5], (planes,), jnp.float32),
    }
    if stride != 1 or in_planes != planes:
        p["ws"] = 0.1 * jax.random.normal(ks[6], (1, 1, in_planes, planes), jnp.float32)
        p["gs"] = 1.0 + 0.1 * jax.random.normal(ks[7], (planes,), jnp.float32)
        p["bs"] = 0.1 * jax.random.normal(ks[8], (planes,), jnp.float32)
    return p


def _conv_ref(x, w, stride, pad):
    return lax.conv_general_dilated(
        x, w, (stride, stride), ((pad, pad), (pad, pad)),
        dimension_numbers=("NHWC", "HWIO", "NHWC"),
        precision=lax.Precision.HIGHEST)


def _bn_ref(y, g, b):
    mean = jnp.mean(y, axis=(0, 1, 2), keepdims=True)
    var = jnp.mean((y - mean) ** 2, axis=(0, 1, 2), keepdims=True)
    return ((y - mean) * lax.rsqrt(var + EPS) * g.reshape(1, 1, 1, -1)
            + b.reshape(1, 1, 1, -1))


def reference_forward(x_nchw, params, stride=1):
    x = jnp.transpose(x_nchw, (0, 2, 3, 1)).astype(jnp.float32)
    y = _conv_ref(x, params["w1"], stride, 1)
    y = jnp.maximum(_bn_ref(y, params["g1"], params["b1"]), 0.0)
    y = _conv_ref(y, params["w2"], 1, 1)
    y = _bn_ref(y, params["g2"], params["b2"])
    if "ws" in params:
        s = _conv_ref(x, params["ws"], stride, 0)
        s = _bn_ref(s, params["gs"], params["bs"])
    else:
        s = x[:, ::stride, ::stride, :]
    return jnp.transpose(jnp.maximum(y + s, 0.0), (0, 3, 1, 2))


# ---------------------------------- main --------------------------------------

if __name__ == "__main__":
    key = jax.random.PRNGKey(0)

    configs = [
        # projection shortcut (in_planes != planes), stride 1
        dict(in_planes=4, planes=8, stride=1, N=2, H=16, W=16),
        # identity shortcut
        dict(in_planes=8, planes=8, stride=1, N=2, H=16, W=16),
    ]
    for cfg in configs:
        key, kx, kp = jax.random.split(key, 3)
        x = jax.random.normal(
            kx, (cfg["N"], cfg["in_planes"], cfg["H"], cfg["W"]), jnp.float32)
        params = init_params(kp, cfg["in_planes"], cfg["planes"], cfg["stride"])

        out = jax.block_until_ready(
            basic_block_forward(x, params, stride=cfg["stride"]))
        ref = reference_forward(x, params, stride=cfg["stride"])

        assert out.shape == ref.shape == (cfg["N"], cfg["planes"],
                                          cfg["H"], cfg["W"])
        max_err = float(jnp.max(jnp.abs(out - ref)))
        # Tolerance sized for bf16 MXU operands (f32 accumulation) vs. the
        # f32 HIGHEST-precision reference; real bugs give O(0.1-1) errors.
        assert jnp.allclose(out, ref, atol=3e-2, rtol=3e-2), f"max_err={max_err}"

    print("KERNEL_OK")
</pallas_src>

<mosaic_0001>
module attributes {stable_mosaic.version = 11 : i64} {
  func.func @kernel(%arg0: i32, %arg1: memref<1x16x16x4xf32, #tpu.memory_space<vmem>>, %arg2: memref<36x8xbf16, #tpu.memory_space<vmem>>, %arg3: memref<4x8xbf16, #tpu.memory_space<vmem>>, %arg4: memref<1x16x16x8xf32, #tpu.memory_space<vmem>>, %arg5: memref<1x2x8xf32, #tpu.memory_space<vmem>>, %arg6: memref<1x16x16x8xf32, #tpu.memory_space<vmem>>, %arg7: memref<1x2x8xf32, #tpu.memory_space<vmem>>) attributes {dimension_semantics = [#tpu.dimension_semantics<parallel>], iteration_bounds = array<i64: 2>, scalar_prefetch = 0 : i64, scratch_operands = 0 : i64, tpu.core_type = #tpu.core_type<tc>, window_params = [{transform_indices = @transform_0, window_bounds = array<i64: 1, 16, 16, 4>}, {pipeline_mode = #tpu.pipeline_mode<synchronous>, transform_indices = @transform_1, window_bounds = array<i64: 36, 8>}, {pipeline_mode = #tpu.pipeline_mode<synchronous>, transform_indices = @transform_2, window_bounds = array<i64: 4, 8>}, {transform_indices = @transform_3, window_bounds = array<i64: 1, 16, 16, 8>}, {transform_indices = @transform_4, window_bounds = array<i64: 1, 2, 8>}, {transform_indices = @transform_5, window_bounds = array<i64: 1, 16, 16, 8>}, {transform_indices = @transform_6, window_bounds = array<i64: 1, 2, 8>}]} {
    %c0 = arith.constant 0 : index
    %c0_0 = arith.constant 0 : index
    %c0_1 = arith.constant 0 : index
    %c0_2 = arith.constant 0 : index
    %0 = vector.load %arg1[%c0, %c0_0, %c0_1, %c0_2] : memref<1x16x16x4xf32, #tpu.memory_space<vmem>>, vector<1x16x16x4xf32>
    %cst = arith.constant 0.000000e+00 : f32
    %1 = vector.broadcast %cst : f32 to vector<1x1x16x4xf32>
    %2 = tpu.concatenate %1, %0, %1 in 1 : vector<1x1x16x4xf32>, vector<1x16x16x4xf32>, vector<1x1x16x4xf32> -> vector<1x18x16x4xf32>
    %cst_3 = arith.constant 0.000000e+00 : f32
    %3 = vector.broadcast %cst_3 : f32 to vector<1x18x1x4xf32>
    %4 = tpu.concatenate %3, %2, %3 in 2 : vector<1x18x1x4xf32>, vector<1x18x16x4xf32>, vector<1x18x1x4xf32> -> vector<1x18x18x4xf32>
    %5 = vector.extract_strided_slice %4 {offsets = [0, 1, 1, 0], sizes = [1, 16, 16, 4], strides = [1, 1, 1, 1]} : vector<1x18x18x4xf32> to vector<1x16x16x4xf32>
    %6 = vector.shape_cast %5 : vector<1x16x16x4xf32> to vector<256x4xf32>
    %7 = arith.truncf %6 : vector<256x4xf32> to vector<256x4xbf16>
    %c0_4 = arith.constant 0 : index
    %c0_5 = arith.constant 0 : index
    %8 = vector.load %arg3[%c0_4, %c0_5] : memref<4x8xbf16, #tpu.memory_space<vmem>>, vector<4x8xbf16>
    %cst_6 = arith.constant dense<0.000000e+00> : vector<256x8xf32>
    %9 = tpu.matmul %7, %8, %cst_6 {dimension_numbers = #tpu.dot_dimension_numbers<[1], [0], [0], [1], [0, 0, 1, 1], [], []>} : vector<256x4xbf16>, vector<4x8xbf16>, vector<256x8xf32> -> vector<256x8xf32>
    %cst_7 = arith.constant dense<0.000000e+00> : vector<8xf32>
    %10 = vector.multi_reduction <add>, %9, %cst_7 [0] : vector<256x8xf32> to vector<8xf32>
    %11 = vector.shape_cast %10 : vector<8xf32> to vector<1x8xf32>
    %cst_8 = arith.constant 3.906250e-03 : f32
    %12 = vector.broadcast %cst_8 : f32 to vector<1x8xf32>
    %13 = arith.mulf %11, %12 : vector<1x8xf32>
    %14 = vector.broadcast %13 : vector<1x8xf32> to vector<256x8xf32>
    %15 = arith.subf %9, %14 : vector<256x8xf32>
    %16 = arith.mulf %15, %15 : vector<256x8xf32>
    %cst_9 = arith.constant dense<0.000000e+00> : vector<8xf32>
    %17 = vector.multi_reduction <add>, %16, %cst_9 [0] : vector<256x8xf32> to vector<8xf32>
    %18 = vector.shape_cast %17 : vector<8xf32> to vector<1x8xf32>
    %19 = tpu.concatenate %11, %18 in 0 : vector<1x8xf32>, vector<1x8xf32> -> vector<2x8xf32>
    %c0_10 = arith.constant 0 : index
    %c0_11 = arith.constant 0 : index
    %c0_12 = arith.constant 0 : index
    %20 = vector.load %arg7[%c0_10, %c0_11, %c0_12] : memref<1x2x8xf32, #tpu.memory_space<vmem>>, vector<1x2x8xf32>
    %21 = vector.shape_cast %20 : vector<1x2x8xf32> to vector<2x8xf32>
    %22 = vector.shape_cast %19 : vector<2x8xf32> to vector<1x2x8xf32>
    tpu.vector_store %arg7[%c0_10, %c0_11, %c0_12], %22 {strides = array<i32>} : memref<1x2x8xf32, #tpu.memory_space<vmem>>, vector<1x2x8xf32>,
    %23 = vector.shape_cast %9 : vector<256x8xf32> to vector<1x16x16x8xf32>
    %c0_13 = arith.constant 0 : index
    %c0_14 = arith.constant 0 : index
    %c0_15 = arith.constant 0 : index
    %c0_16 = arith.constant 0 : index
    %24 = vector.load %arg6[%c0_13, %c0_14, %c0_15, %c0_16] : memref<1x16x16x8xf32, #tpu.memory_space<vmem>>, vector<1x16x16x8xf32>
    tpu.vector_store %arg6[%c0_13, %c0_14, %c0_15, %c0_16], %23 {strides = array<i32>} : memref<1x16x16x8xf32, #tpu.memory_space<vmem>>, vector<1x16x16x8xf32>,
    %cst_17 = arith.constant 0.000000e+00 : f32
    %25 = vector.broadcast %cst_17 : f32 to vector<256x8xf32>
    %26 = vector.extract_strided_slice %4 {offsets = [0, 0, 0, 0], sizes = [1, 16, 16, 4], strides = [1, 1, 1, 1]} : vector<1x18x18x4xf32> to vector<1x16x16x4xf32>
    %27 = vector.shape_cast %26 : vector<1x16x16x4xf32> to vector<256x4xf32>
    %28 = vector.extract_strided_slice %4 {offsets = [0, 0, 1, 0], sizes = [1, 16, 16, 4], strides = [1, 1, 1, 1]} : vector<1x18x18x4xf32> to vector<1x16x16x4xf32>
    %29 = vector.shape_cast %28 : vector<1x16x16x4xf32> to vector<256x4xf32>
    %30 = vector.extract_strided_slice %4 {offsets = [0, 0, 2, 0], sizes = [1, 16, 16, 4], strides = [1, 1, 1, 1]} : vector<1x18x18x4xf32> to vector<1x16x16x4xf32>
    %31 = vector.shape_cast %30 : vector<1x16x16x4xf32> to vector<256x4xf32>
    %32 = tpu.concatenate %27, %29, %31 in 1 : vector<256x4xf32>, vector<256x4xf32>, vector<256x4xf32> -> vector<256x12xf32>
    %33 = arith.truncf %32 : vector<256x12xf32> to vector<256x12xbf16>
    %c0_18 = arith.constant 0 : index
    %c0_19 = arith.constant 0 : index
    %34 = vector.load %arg2[%c0_18, %c0_19] : memref<36x8xbf16, #tpu.memory_space<vmem>>, vector<12x8xbf16>
    %cst_20 = arith.constant dense<0.000000e+00> : vector<256x8xf32>
    %35 = tpu.matmul %33, %34, %cst_20 {dimension_numbers = #tpu.dot_dimension_numbers<[1], [0], [0], [1], [0, 0, 1, 1], [], []>} : vector<256x12xbf16>, vector<12x8xbf16>, vector<256x8xf32> -> vector<256x8xf32>
    %36 = arith.addf %25, %35 : vector<256x8xf32>
    %37 = vector.extract_strided_slice %4 {offsets = [0, 1, 0, 0], sizes = [1, 16, 16, 4], strides = [1, 1, 1, 1]} : vector<1x18x18x4xf32> to vector<1x16x16x4xf32>
    %38 = vector.shape_cast %37 : vector<1x16x16x4xf32> to vector<256x4xf32>
    %39 = vector.extract_strided_slice %4 {offsets = [0, 1, 1, 0], sizes = [1, 16, 16, 4], strides = [1, 1, 1, 1]} : vector<1x18x18x4xf32> to vector<1x16x16x4xf32>
    %40 = vector.shape_cast %39 : vector<1x16x16x4xf32> to vector<256x4xf32>
    %41 = vector.extract_strided_slice %4 {offsets = [0, 1, 2, 0], sizes = [1, 16, 16, 4], strides = [1, 1, 1, 1]} : vector<1x18x18x4xf32> to vector<1x16x16x4xf32>
    %42 = vector.shape_cast %41 : vector<1x16x16x4xf32> to vector<256x4xf32>
    %43 = tpu.concatenate %38, %40, %42 in 1 : vector<256x4xf32>, vector<256x4xf32>, vector<256x4xf32> -> vector<256x12xf32>
    %44 = arith.truncf %43 : vector<256x12xf32> to vector<256x12xbf16>
    %c12 = arith.constant 12 : index
    %c0_21 = arith.constant 0 : index
    %45 = vector.load %arg2[%c12, %c0_21] : memref<36x8xbf16, #tpu.memory_space<vmem>>, vector<12x8xbf16>
    %cst_22 = arith.constant dense<0.000000e+00> : vector<256x8xf32>
    %46 = tpu.matmul %44, %45, %cst_22 {dimension_numbers = #tpu.dot_dimension_numbers<[1], [0], [0], [1], [0, 0, 1, 1], [], []>} : vector<256x12xbf16>, vector<12x8xbf16>, vector<256x8xf32> -> vector<256x8xf32>
    %47 = arith.addf %36, %46 : vector<256x8xf32>
    %48 = vector.extract_strided_slice %4 {offsets = [0, 2, 0, 0], sizes = [1, 16, 16, 4], strides = [1, 1, 1, 1]} : vector<1x18x18x4xf32> to vector<1x16x16x4xf32>
    %49 = vector.shape_cast %48 : vector<1x16x16x4xf32> to vector<256x4xf32>
    %50 = vector.extract_strided_slice %4 {offsets = [0, 2, 1, 0], sizes = [1, 16, 16, 4], strides = [1, 1, 1, 1]} : vector<1x18x18x4xf32> to vector<1x16x16x4xf32>
    %51 = vector.shape_cast %50 : vector<1x16x16x4xf32> to vector<256x4xf32>
    %52 = vector.extract_strided_slice %4 {offsets = [0, 2, 2, 0], sizes = [1, 16, 16, 4], strides = [1, 1, 1, 1]} : vector<1x18x18x4xf32> to vector<1x16x16x4xf32>
    %53 = vector.shape_cast %52 : vector<1x16x16x4xf32> to vector<256x4xf32>
    %54 = tpu.concatenate %49, %51, %53 in 1 : vector<256x4xf32>, vector<256x4xf32>, vector<256x4xf32> -> vector<256x12xf32>
    %55 = arith.truncf %54 : vector<256x12xf32> to vector<256x12xbf16>
    %c24 = arith.constant 24 : index
    %c0_23 = arith.constant 0 : index
    %56 = vector.load %arg2[%c24, %c0_23] : memref<36x8xbf16, #tpu.memory_space<vmem>>, vector<12x8xbf16>
    %cst_24 = arith.constant dense<0.000000e+00> : vector<256x8xf32>
    %57 = tpu.matmul %55, %56, %cst_24 {dimension_numbers = #tpu.dot_dimension_numbers<[1], [0], [0], [1], [0, 0, 1, 1], [], []>} : vector<256x12xbf16>, vector<12x8xbf16>, vector<256x8xf32> -> vector<256x8xf32>
    %58 = arith.addf %47, %57 : vector<256x8xf32>
    %cst_25 = arith.constant dense<0.000000e+00> : vector<8xf32>
    %59 = vector.multi_reduction <add>, %58, %cst_25 [0] : vector<256x8xf32> to vector<8xf32>
    %60 = vector.shape_cast %59 : vector<8xf32> to vector<1x8xf32>
    %cst_26 = arith.constant 3.906250e-03 : f32
    %61 = vector.broadcast %cst_26 : f32 to vector<1x8xf32>
    %62 = arith.mulf %60, %61 : vector<1x8xf32>
    %63 = vector.broadcast %62 : vector<1x8xf32> to vector<256x8xf32>
    %64 = arith.subf %58, %63 : vector<256x8xf32>
    %65 = arith.mulf %64, %64 : vector<256x8xf32>
    %cst_27 = arith.constant dense<0.000000e+00> : vector<8xf32>
    %66 = vector.multi_reduction <add>, %65, %cst_27 [0] : vector<256x8xf32> to vector<8xf32>
    %67 = vector.shape_cast %66 : vector<8xf32> to vector<1x8xf32>
    %68 = tpu.concatenate %60, %67 in 0 : vector<1x8xf32>, vector<1x8xf32> -> vector<2x8xf32>
    %c0_28 = arith.constant 0 : index
    %c0_29 = arith.constant 0 : index
    %c0_30 = arith.constant 0 : index
    %69 = vector.load %arg5[%c0_28, %c0_29, %c0_30] : memref<1x2x8xf32, #tpu.memory_space<vmem>>, vector<1x2x8xf32>
    %70 = vector.shape_cast %69 : vector<1x2x8xf32> to vector<2x8xf32>
    %71 = vector.shape_cast %68 : vector<2x8xf32> to vector<1x2x8xf32>
    tpu.vector_store %arg5[%c0_28, %c0_29, %c0_30], %71 {strides = array<i32>} : memref<1x2x8xf32, #tpu.memory_space<vmem>>, vector<1x2x8xf32>,
    %72 = vector.shape_cast %58 : vector<256x8xf32> to vector<1x16x16x8xf32>
    %c0_31 = arith.constant 0 : index
    %c0_32 = arith.constant 0 : index
    %c0_33 = arith.constant 0 : index
    %c0_34 = arith.constant 0 : index
    %73 = vector.load %arg4[%c0_31, %c0_32, %c0_33, %c0_34] : memref<1x16x16x8xf32, #tpu.memory_space<vmem>>, vector<1x16x16x8xf32>
    tpu.vector_store %arg4[%c0_31, %c0_32, %c0_33, %c0_34], %72 {strides = array<i32>} : memref<1x16x16x8xf32, #tpu.memory_space<vmem>>, vector<1x16x16x8xf32>,
    return
  }
  func.func @transform_0(%arg0: i32) -> (i32, i32, i32, i32) {
    %c0_i32 = arith.constant 0 : i32
    %c0_i32_0 = arith.constant 0 : i32
    %c0_i32_1 = arith.constant 0 : i32
    %c0_i32_2 = arith.constant 0 : i32
    return %arg0, %c0_i32, %c0_i32_0, %c0_i32_1 : i32, i32, i32, i32
  }
  func.func @transform_1(%arg0: i32) -> (i32, i32) {
    %c0_i32 = arith.constant 0 : i32
    %c0_i32_0 = arith.constant 0 : i32
    %c0_i32_1 = arith.constant 0 : i32
    return %c0_i32, %c0_i32_0 : i32, i32
  }
  func.func @transform_2(%arg0: i32) -> (i32, i32) {
    %c0_i32 = arith.constant 0 : i32
    %c0_i32_0 = arith.constant 0 : i32
    %c0_i32_1 = arith.constant 0 : i32
    return %c0_i32, %c0_i32_0 : i32, i32
  }
  func.func @transform_3(%arg0: i32) -> (i32, i32, i32, i32) {
    %c0_i32 = arith.constant 0 : i32
    %c0_i32_0 = arith.constant 0 : i32
    %c0_i32_1 = arith.constant 0 : i32
    %c0_i32_2 = arith.constant 0 : i32
    return %arg0, %c0_i32, %c0_i32_0, %c0_i32_1 : i32, i32, i32, i32
  }
  func.func @transform_4(%arg0: i32) -> (i32, i32, i32) {
    %c0_i32 = arith.constant 0 : i32
    %c0_i32_0 = arith.constant 0 : i32
    %c0_i32_1 = arith.constant 0 : i32
    return %arg0, %c0_i32, %c0_i32_0 : i32, i32, i32
  }
  func.func @transform_5(%arg0: i32) -> (i32, i32, i32, i32) {
    %c0_i32 = arith.constant 0 : i32
    %c0_i32_0 = arith.constant 0 : i32
    %c0_i32_1 = arith.constant 0 : i32
    %c0_i32_2 = arith.constant 0 : i32
    return %arg0, %c0_i32, %c0_i32_0, %c0_i32_1 : i32, i32, i32, i32
  }
  func.func @transform_6(%arg0: i32) -> (i32, i32, i32) {
    %c0_i32 = arith.constant 0 : i32
    %c0_i32_0 = arith.constant 0 : i32
    %c0_i32_1 = arith.constant 0 : i32
    return %arg0, %c0_i32, %c0_i32_0 : i32, i32, i32
  }
}

</mosaic_0001>

<bundles_post_ra>
// kernel: tpu_custom_call.1
= control target key start
LH: loop header
LB: loop body
LE: loop exit
PB: predicated region body
PF: predicated region fallthrough
CT: control target
= control target key end

     0   :  { %12 = vsyncpa [#allocation3], 0  ;;  %s4091_s0 = inlined_call_operand.vmem [shape: f32[2,16,16,4], index: 0, kind: input, shape index: {}]   ;;  %s4092_s1 = inlined_call_operand.vmem [shape: bf16[36,8], index: 1, kind: input, shape index: {}]   ;;  %s4093_s2 = inlined_call_operand.vmem [shape: bf16[4,8], index: 2, kind: input, shape index: {}]   ;;  %s4094_s3 = inlined_call_operand.vmem [shape: f32[2,16,16,8], index: 3, kind: output, shape index: {0}]   ;;  %s4095_s4 = inlined_call_operand.hbm [shape: f32[2,2,8], index: 4, kind: output, shape index: {1}]   ;;  %s4096_s5 = inlined_call_operand.vmem [shape: f32[2,16,16,8], index: 5, kind: output, shape index: {2}]   ;;  %s4097_s6 = inlined_call_operand.hbm [shape: f32[2,2,8], index: 6, kind: output, shape index: {3}]  }
   0x1   :  { %14 = vsyncpa [#allocation3 + $0x1], 0 }
   0x2   :  { %15 = vsyncpa [#allocation5], 0 }
   0x3   :  { %17 = vsyncpa [#allocation5 + $0x1], 0  ;;  %s2674_s21 = smov 0   ;;  %s2676_s22 = smov 0  }
   0x4   :  { %s2678_s23 = smov 0   ;;  %s2680_s24 = smov 0  }
   0x5 LB: > { %s2695_s25 = sadd.s32 4294967295, %s2634_s24   ;;  %s2223_s26 = sadd.s32 4294967294, %s2634_s24   ;;  %s2634_s24 = sphi %s2680_s24, %s4142_s24   ;;  %s2630_s23 = sphi %s2678_s23, %s4141_s23   ;;  %s2626_s22 = sphi %s2676_s22, %s4140_s22   ;;  %s2622_s21 = sphi %s2674_s21, %s4139_s21  }
   0x6   : > { %s2699_s27 = sadd.s32 1, %s2634_s24   ;;  %s124_s28 = sadd.s32 1, %s2630_s23 }
   0x7   : > { %s121_s29 = ssub.s32 %s2634_s24, %s2699_s27  ;;  %p134_p0 = scmp.ne.s32.totalorder %s2630_s23, %s2626_s22 }
   0x8   : > { %p122_p1 = scmp.eq.s32.totalorder %s121_s29, 0  ;;  %p135_p2 = scmp.eq.s32.totalorder %s2695_s25, 1 }
   0x9   : > { %p140_p3 = scmp.ne.s32.totalorder %s2626_s22, %s2622_s21  ;;  %p141_p4 = scmp.eq.s32.totalorder %s2223_s26, 1 }
   0xa   : > { %s2710_s30 = scalar_select %p122_p1, %s2630_s23, %s124_s28  }
   0xb   : > { %p2712_p5 = por %p135_p2, %p134_p0  ;;  %p2716_p6 = por %p141_p4, %p140_p3 }
   0xc   : > { %p2226_p7 = scmp.ge.s32.totalorder %s2634_s24, 1  ;;  %p225_p8 = scmp.lt.s32.totalorder %s2634_s24, 3 }
   0xe   : > { %p226_p9 = pnand %p2226_p7, %p225_p8 }
  0x10   : > { %229 = sbr.rel (%p226_p9) target bundleno = 646 (0x286), region = 32 }
  0x15   : > { %vm351_vm0 = vcmask 1040384   ;;  %v647_v0 = vld [vmem:[%s4093_s2] sm:$0x3]  ;;  %v2636_v1 = vmov 0.0   ;;  %vm697_vm1 = vcmask 1041408   ;;  %p270_p10 = scmp.lt.s32.totalorder %s2695_s25, 1 }
  0x16   : > { %v2725_v2 = vrot.slane %v2636_v1, 7  ;;  %vm518_vm2 = vcmask 1046528   ;;  %v699_v3 = vsel %vm697_vm1, %v647_v0, 0  ;;  %vm1036_vm3 = vcmask 1045504   ;;  %s2637_s16 = smov 4   ;;  %s2638_s17 = smov 8  }
  0x17   : > { %708 = vmatpush.bf16.msra.mxu0 %v699_v3  ;;  %s271_s11 = scalar_select %p270_p10, %s2695_s25, 1  ;;  %vm648_vm4 = vcmask 31744   ;;  %vm790_vm5 = vcmask 64512   ;;  %vm1421_vm6 = vcmask 97280   ;;  %vm995_vm7 = vcmask 58368  }
  0x18   : > { %v2730_v4 = vsel %vm351_vm0, 0.0, %v2725_v2  ;;  %v469_v5 = vsel %vm351_vm0, %v2725_v2, 0.0  ;;  %v1032_v6 = vrot.slane %v2725_v2, 1  ;;  %v1038_v7 = vrot.slane %v2725_v2, 2  ;;  %s2313_s9 = sshll.u32 %s2695_s25, 1 }
  0x19   : > { %v1031_v8 = vrot.slane %v2730_v4, 1  ;;  %v1034_v9 = vrot.slane %v469_v5, 1  ;;  %v1040_v10 = vrot.slane %v469_v5, 2  ;;  %v1037_v11 = vrot.slane %v2730_v4, 2  ;;  %s2739_s12 = sshll.u32 %s271_s11, 8  ;;  %s2076_s13 = scalar_lea.hbm %s4097_s6, %s2313_s9 }
  0x1a   : > { %s2747_s15 = scalar_lea.vmem %s4091_s0, %s2739_s12  ;;  %s3046_s26 = scalar_lea.vmem %s4096_s5, %s2739_s12 }
  0x1b   : > { %v1033_v12 = vsel %vm518_vm2, %v1031_v8, %v1032_v6  ;;  %v1035_v13 = vsel %vm518_vm2, %v1032_v6, %v1034_v9  ;;  %v1039_v14 = vsel %vm1036_vm3, %v1037_v11, %v1038_v7  ;;  %v1041_v15 = vsel %vm1036_vm3, %v1038_v7, %v1040_v10  ;;  %v288_v17 = vld [vmem:[%s2747_s15 + $0x10] sm:$0xff]  ;;  %v289_v18 = vld [vmem:[%s2747_s15 + $0x18] sm:$0xff]  ;;  %v286_v19 = vld [vmem:[%s2747_s15] sm:$0xff]  ;;  %s2080_s18 = sshll.u32 %s2076_s13, 4  ;;  %s2081_s18 = int_to_ptr.hbm [resolvable:$true] %s2080_s18 }
  0x1c   : > { %v2370_v16 = vpack.i.bf16 %v1035_v13, %v1033_v12  ;;  %v357_v20 = vrot.slane %v288_v17, 7  ;;  %v358_v21 = vrot.slane %v289_v18, 7  ;;  %v287_v22 = vld [vmem:[%s2747_s15 + $0x8] sm:$0xff]  ;;  %v354_v23 = vrot.slane %v286_v19, 7  ;;  %v290_v24 = vld [vmem:[%s2747_s15 + $0x20] sm:$0xff]  ;;  %v292_v58 = vld [vmem:[%s2747_s15 + $0x30] sm:$0xff] }
  0x1d   : > { %v291_v25 = vld [vmem:[%s2747_s15 + $0x28] sm:$0xff]  ;;  %v355_v26 = vrot.slane %v287_v22, 7  ;;  %v2375_v27 = vpack.i.bf16 %v1041_v15, %v1039_v14  ;;  %v360_v28 = vrot.slane %v290_v24, 7  ;;  %v293_v59 = vld [vmem:[%s2747_s15 + $0x38] sm:$0xff]  ;;  %v363_v7 = vrot.slane %v292_v58, 7  ;;  %s2554_s20 = sshra.s32 %s2081_s18, 4  ;;  %s2555_s20 = int_to_ptr.hbm [resolvable:$true] %s2554_s20 }
  0x1e   : > { %2371 = vrot.lane.b32.xlu0 %v2370_v16, %s2637_s16  ;;  %v361_v29 = vrot.slane %v291_v25, 7  ;;  %v2759_v30 = vsel %vm351_vm0, %v357_v20, %v358_v21  ;;  %v2762_v31 = vsel %vm351_vm0, 0.0, %v357_v20  ;;  %v471_v32 = vsel %vm351_vm0, %v358_v21, 0.0  ;;  %p2561_p0 = scmp.lt.s32.totalorder %s2555_s20, %s4097_s6 }
  0x1f   : > { %v2766_v33 = vsel %vm351_vm0, 0.0, %v354_v23  ;;  %v524_v34 = vrot.slane %v2762_v31, 1  ;;  %v525_v35 = vrot.slane %v2759_v30, 1  ;;  %v527_v36 = vrot.slane %v471_v32, 1 }
  0x20   : > { %v1050_v37 = vrot.slane %v471_v32, 2  ;;  %v2771_v38 = vsel %vm351_vm0, %v354_v23, %v355_v26  ;;  %v470_v39 = vsel %vm351_vm0, %v355_v26, 0.0  ;;  %v519_v40 = vrot.slane %v2766_v33, 1 }
  0x21   : > { %v1047_v41 = vrot.slane %v2762_v31, 2  ;;  %v2777_v42 = vsel %vm518_vm2, %v524_v34, %v525_v35  ;;  %v2780_v43 = vsel %vm518_vm2, %v525_v35, %v527_v36  ;;  %v520_v44 = vrot.slane %v2771_v38, 1  ;;  %v294_v34 = vld [vmem:[%s2747_s15 + $0x40] sm:$0xff]  ;;  %v295_v35 = vld [vmem:[%s2747_s15 + $0x48] sm:$0xff] }
  0x22   : > { %v522_v45 = vrot.slane %v470_v39, 1  ;;  %v2380_v46 = vpack.i.bf16 %v2780_v43, %v2777_v42  ;;  %v1048_v47 = vrot.slane %v2759_v30, 2  ;;  %v1042_v48 = vrot.slane %v2766_v33, 2 }
  0x23   : > { %v521_v49 = vsel %vm518_vm2, %v519_v40, %v520_v44  ;;  %v1043_v51 = vrot.slane %v2771_v38, 2  ;;  %v1045_v52 = vrot.slane %v470_v39, 2  ;;  %v2795_v57 = vsel %vm351_vm0, %v360_v28, %v361_v29 }
  0x24   : > { %v523_v50 = vsel %vm518_vm2, %v520_v44, %v522_v45  ;;  %2381 = vrot.lane.b32.xlu1 %v2380_v46, %s2637_s16  ;;  %v1049_v55 = vsel %vm1036_vm3, %v1047_v41, %v1048_v47  ;;  %v1051_v56 = vsel %vm1036_vm3, %v1048_v47, %v1050_v37  ;;  %v2802_v60 = vsel %vm351_vm0, 0.0, %v360_v28 }
  0x25   : > { %v631_v53 = vpack.c.bf16 %v523_v50, %v521_v49  ;;  %v2390_v54 = vpack.i.bf16 %v523_v50, %v521_v49  ;;  %v472_v61 = vsel %vm351_vm0, %v361_v29, 0.0  ;;  %v530_v62 = vrot.slane %v2795_v57, 1 }
  0x26   : > { %2376 = vrot.lane.b32.xlu0 %v2375_v27, %s2638_s17  ;;  %v1044_v63 = vsel %vm1036_vm3, %v1042_v48, %v1043_v51  ;;  %v1046_v0 = vsel %vm1036_vm3, %v1043_v51, %v1045_v52  ;;  %v529_v1 = vrot.slane %v2802_v60, 1  ;;  %v532_v3 = vrot.slane %v472_v61, 1  ;;  %v296_v52 = vld [vmem:[%s2747_s15 + $0x50] sm:$0xff] }
  0x27   : > { %2235 = vmatmul.msk.bf16.vlgmr.msra.gmra.mxu0 %vm648_vm4, %v631_v53  ;;  %2391 = vrot.lane.b32.xlu2 %v2390_v54, %s2637_s16  ;;  %v2385_v5 = vpack.i.bf16 %v1051_v56, %v1049_v55  ;;  %v1052_v6 = vrot.slane %v2802_v60, 2  ;;  %v364_v8 = vrot.slane %v293_v59, 7  ;;  %v1053_v11 = vrot.slane %v2795_v57, 2  ;;  %v297_v53 = vld [vmem:[%s2747_s15 + $0x58] sm:$0xff] }
  0x28   : > { %v531_v9 = vsel %vm518_vm2, %v529_v1, %v530_v62  ;;  %v533_v10 = vsel %vm518_vm2, %v530_v62, %v532_v3  ;;  %v1055_v12 = vrot.slane %v472_v61, 2  ;;  %v2395_v13 = vpack.i.bf16 %v1046_v0, %v1044_v63 }
  0x29   : > { %v2400_v14 = vpack.i.bf16 %v533_v10, %v531_v9  ;;  %v2814_v15 = vsel %vm351_vm0, %v363_v7, %v364_v8  ;;  %v2817_v16 = vsel %vm351_vm0, 0.0, %v363_v7  ;;  %v473_v17 = vsel %vm351_vm0, %v364_v8, 0.0 }
  0x2a   : > { %v1058_v18 = vrot.slane %v2814_v15, 2  ;;  %v1057_v19 = vrot.slane %v2817_v16, 2  ;;  %v1060_v20 = vrot.slane %v473_v17, 2  ;;  %v1054_v21 = vsel %vm1036_vm3, %v1052_v6, %v1053_v11 }
  0x2b   : > { %v1056_v22 = vsel %vm1036_vm3, %v1053_v11, %v1055_v12  ;;  %v534_v27 = vrot.slane %v2817_v16, 1  ;;  %v535_v28 = vrot.slane %v2814_v15, 1  ;;  %v537_v29 = vrot.slane %v473_v17, 1 }
  0x2c   : > { %2386 = vrot.lane.b32.xlu1 %v2385_v5, %s2638_s17  ;;  %v1059_v23 = vsel %vm1036_vm3, %v1057_v19, %v1058_v18  ;;  %v1061_v24 = vsel %vm1036_vm3, %v1058_v18, %v1060_v20  ;;  %v2405_v25 = vpack.i.bf16 %v1056_v22, %v1054_v21  ;;  %v632_v32 = vpack.c.bf16 %v2780_v43, %v2777_v42  ;;  %v298_v20 = vld [vmem:[%s2747_s15 + $0x60] sm:$0xff]  ;;  %v299_v21 = vld [vmem:[%s2747_s15 + $0x68] sm:$0xff] }
  0x2d   : > { %v2415_v26 = vpack.i.bf16 %v1061_v24, %v1059_v23  ;;  %v536_v36 = vsel %vm518_vm2, %v534_v27, %v535_v28  ;;  %v538_v37 = vsel %vm518_vm2, %v535_v28, %v537_v29  ;;  %v366_v39 = vrot.slane %v294_v34, 7 }
  0x2e   : > { %2401 = vrot.lane.b32.xlu0 %v2400_v14, %s2637_s16  ;;  %v367_v40 = vrot.slane %v295_v35, 7  ;;  %v2410_v41 = vpack.i.bf16 %v538_v37, %v536_v36  ;;  %v633_v51 = vpack.c.bf16 %v533_v10, %v531_v9  ;;  %v369_v54 = vrot.slane %v296_v52, 7 }
  0x2f   : > { %2396 = vrot.lane.b32.xlu2 %v2395_v13, %s2638_s17  ;;  %v2844_v42 = vsel %vm351_vm0, 0.0, %v366_v39  ;;  %v370_v55 = vrot.slane %v297_v53, 7  ;;  %v634_v19 = vpack.c.bf16 %v538_v37, %v536_v36  ;;  %v372_v22 = vrot.slane %v298_v20, 7  ;;  %v300_v37 = vld [vmem:[%s2747_s15 + $0x70] sm:$0xff]  ;;  %v2320_v20 = vld [vmem:[%s4092_s1] sm:$0x30] }
  0x30   : > { %v2841_v44 = vsel %vm351_vm0, %v366_v39, %v367_v40  ;;  %v474_v43 = vsel %vm351_vm0, %v367_v40, 0.0  ;;  %v539_v45 = vrot.slane %v2844_v42, 1  ;;  %v1062_v56 = vrot.slane %v2844_v42, 2  ;;  %v301_v39 = vld [vmem:[%s2747_s15 + $0x78] sm:$0xff] }
  0x31   : > { %v540_v46 = vrot.slane %v2841_v44, 1  ;;  %v542_v47 = vrot.slane %v474_v43, 1  ;;  %v1063_v58 = vrot.slane %v2841_v44, 2  ;;  %v1065_v59 = vrot.slane %v474_v43, 2 }
  0x32   : > { %v2859_v61 = vsel %vm351_vm0, %v369_v54, %v370_v55  ;;  %v2862_v62 = vsel %vm351_vm0, 0.0, %v369_v54  ;;  %v475_v63 = vsel %vm351_vm0, %v370_v55, 0.0  ;;  %v373_v23 = vrot.slane %v299_v21, 7 }
  0x33   : > { %v541_v48 = vsel %vm518_vm2, %v539_v45, %v540_v46  ;;  %v543_v49 = vsel %vm518_vm2, %v540_v46, %v542_v47  ;;  %v544_v0 = vrot.slane %v2862_v62, 1  ;;  %v545_v1 = vrot.slane %v2859_v61, 1 }
  0x34   : > { %2406 = vrot.lane.b32.xlu1 %v2405_v25, %s2638_s17  ;;  %v2420_v50 = vpack.i.bf16 %v543_v49, %v541_v48  ;;  %v547_v3 = vrot.slane %v475_v63, 1  ;;  %v1067_v5 = vrot.slane %v2862_v62, 2  ;;  %v1068_v6 = vrot.slane %v2859_v61, 2 }
  0x35   : > { %v1070_v7 = vrot.slane %v475_v63, 2  ;;  %v1064_v8 = vsel %vm1036_vm3, %v1062_v56, %v1063_v58  ;;  %v1066_v9 = vsel %vm1036_vm3, %v1063_v58, %v1065_v59  ;;  %v546_v10 = vsel %vm518_vm2, %v544_v0, %v545_v1  ;;  %v2253_v56 = vld [vmem:[%s4092_s1 + $0x4] sm:$0xc]  ;;  %v2321_v58 = vld [vmem:[%s4092_s1 + $0x4] sm:$0xf0] }
  0x36   : > { %2416 = vrot.lane.b32.xlu0 %v2415_v26, %s2638_s17  ;;  %v548_v11 = vsel %vm518_vm2, %v545_v1, %v547_v3  ;;  %v2425_v12 = vpack.i.bf16 %v1066_v9, %v1064_v8  ;;  %v1069_v14 = vsel %vm1036_vm3, %v1067_v5, %v1068_v6  ;;  %v2882_v24 = vsel %vm351_vm0, %v372_v22, %v373_v23  ;;  %v303_v8 = vld [vmem:[%s2747_s15 + $0x88] sm:$0xff] }
  0x37   : > { %2236 = vmatmul.msk.bf16.gmra.mxu0 %vm648_vm4, %v632_v32  ;;  %2411 = vrot.lane.b32.xlu2 %v2410_v41, %s2637_s16  ;;  %v2430_v13 = vpack.i.bf16 %v548_v11, %v546_v10  ;;  %v1071_v17 = vsel %vm1036_vm3, %v1068_v6, %v1070_v7  ;;  %v2885_v25 = vsel %vm351_vm0, 0.0, %v372_v22  ;;  %v476_v26 = vsel %vm351_vm0, %v373_v23, 0.0  ;;  %v302_v7 = vld [vmem:[%s2747_s15 + $0x80] sm:$0xff] }
  0x38   : > { %v2435_v18 = vpack.i.bf16 %v1071_v17, %v1069_v14  ;;  %v1072_v27 = vrot.slane %v2885_v25, 2  ;;  %v1073_v28 = vrot.slane %v2882_v24, 2  ;;  %v1075_v29 = vrot.slane %v476_v26, 2 }
  0x39   : > { %v635_v36 = vpack.c.bf16 %v543_v49, %v541_v48  ;;  %v375_v40 = vrot.slane %v300_v37, 7  ;;  %v376_v41 = vrot.slane %v301_v39, 7  ;;  %v549_v53 = vrot.slane %v2885_v25, 1  ;;  %v2293_v37 = vld [vmem:[%s4092_s1 + $0xc] sm:$0xf] }
  0x3a   : > { %v1074_v32 = vsel %vm1036_vm3, %v1072_v27, %v1073_v28  ;;  %v1076_v34 = vsel %vm1036_vm3, %v1073_v28, %v1075_v29  ;;  %v550_v54 = vrot.slane %v2882_v24, 1  ;;  %v552_v55 = vrot.slane %v476_v26, 1  ;;  %v2322_v39 = vld [vmem:[%s4092_s1 + $0xc] sm:$0x30] }
  0x3b   : > { %v2445_v35 = vpack.i.bf16 %v1076_v34, %v1074_v32  ;;  %v2897_v43 = vsel %vm351_vm0, %v375_v40, %v376_v41  ;;  %v2900_v45 = vsel %vm351_vm0, 0.0, %v375_v40  ;;  %v2903_v46 = vsel %vm351_vm0, %v376_v41, 0.0 }
  0x3c   : > { %2421 = vrot.lane.b32.xlu1 %v2420_v50, %s2637_s16  ;;  %v554_v47 = vrot.slane %v2900_v45, 1  ;;  %v555_v50 = vrot.slane %v2897_v43, 1  ;;  %v557_v48 = vrot.slane %v2903_v46, 1  ;;  %v2254_v59 = vor.u32 %v2321_v58, %v2253_v56 }
  0x3d   : > { %v551_v0 = vsel %vm518_vm2, %v549_v53, %v550_v54  ;;  %v553_v1 = vsel %vm518_vm2, %v550_v54, %v552_v55  ;;  %v636_v3 = vpack.c.bf16 %v548_v11, %v546_v10  ;;  %v378_v9 = vrot.slane %v302_v7, 7 }
  0x3e   : > { %2431 = vrot.lane.b32.xlu0 %v2430_v13, %s2637_s16  ;;  %v2909_v49 = vsel %vm518_vm2, %v554_v47, %v555_v50  ;;  %v1420_v63 = vrot.slane %v2254_v59, 2  ;;  %v2440_v6 = vpack.i.bf16 %v553_v1, %v551_v0  ;;  %v2294_v41 = vor.u32 %v2322_v39, %v2293_v37 }
  0x3f   : > { %2426 = vrot.lane.b32.xlu2 %v2425_v12, %s2638_s17  ;;  %v379_v12 = vrot.slane %v303_v8, 7  ;;  %v2936_v14 = vsel %vm351_vm0, 0.0, %v378_v9  ;;  %v1077_v47 = vrot.slane %v2900_v45, 2  ;;  %v1080_v53 = vrot.slane %v2903_v46, 2 }
  0x40   : > { %v1471_v5 = vsel %vm1036_vm3, %v1420_v63, 0  ;;  %v559_v11 = vrot.slane %v2936_v14, 1  ;;  %v1082_v21 = vrot.slane %v2936_v14, 2  ;;  %v304_v63 = vld [vmem:[%s2747_s15 + $0x90] sm:$0xff] }
  0x41   : > { %1480 = vmatpush.bf16.msra.mxu1 %v1471_v5  ;;  %v2933_v13 = vsel %vm351_vm0, %v378_v9, %v379_v12  ;;  %v478_v10 = vsel %vm351_vm0, %v379_v12, 0.0  ;;  %v381_v5 = vrot.slane %v304_v63, 7 }
  0x42   : > { %v560_v17 = vrot.slane %v2933_v13, 1  ;;  %v1083_v22 = vrot.slane %v2933_v13, 2  ;;  %v1085_v28 = vrot.slane %v478_v10, 2 }
  0x43   : > { %v2986_v8 = vsel %vm351_vm0, 0.0, %v381_v5 }
  0x44   : > { %2436 = vrot.lane.b32.xlu1 %v2435_v18, %s2638_s17  ;;  %v562_v18 = vrot.slane %v478_v10, 1  ;;  %v2950_v26 = vsel %vm518_vm2, %v559_v11, %v560_v17  ;;  %v1084_v32 = vsel %vm1036_vm3, %v1082_v21, %v1083_v22 }
  0x46   : > { %2446 = vrot.lane.b32.xlu0 %v2445_v35, %s2638_s17  ;;  %v2953_v27 = vsel %vm518_vm2, %v560_v17, %v562_v18  ;;  %v1086_v35 = vsel %vm1036_vm3, %v1083_v22, %v1085_v28 }
  0x47   : > { %2237 = vmatmul.msk.bf16.gmra.mxu0 %vm648_vm4, %v633_v51  ;;  %v2912_v51 = vsel %vm518_vm2, %v555_v50, %v557_v48  ;;  %2441 = vrot.lane.b32.xlu2 %v2440_v6, %s2637_s16  ;;  %v2460_v29 = vpack.i.bf16 %v2953_v27, %v2950_v26  ;;  %v1078_v50 = vrot.slane %v2897_v43, 2  ;;  %v637_v48 = vpack.c.bf16 %v553_v1, %v551_v0 }
  0x48   : > { %v2450_v52 = vpack.i.bf16 %v2912_v51, %v2909_v49  ;;  %v638_v28 = vpack.c.bf16 %v2912_v51, %v2909_v49 }
  0x49   : > { %v1079_v55 = vsel %vm1036_vm3, %v1077_v47, %v1078_v50  ;;  %v1081_v58 = vsel %vm1036_vm3, %v1078_v50, %v1080_v53 }
  0x4a   : > { %v2455_v59 = vpack.i.bf16 %v1081_v58, %v1079_v55 }
  0x4c   : > { %2451 = vrot.lane.b32.xlu1 %v2450_v52, %s2637_s16  ;;  %v1670_v52 = vsel %vm1036_vm3, %v2294_v41, 0 }
  0x4d   : > { %1679 = vmatpush.bf16.msra.mxu3 %v1670_v52 }
  0x4e   : > { %2461 = vrot.lane.b32.xlu0 %v2460_v29, %s2637_s16  ;;  %v306_v29 = vld [vmem:[%s2747_s15 + $0xa0] sm:$0xff] }
  0x4f   : > { %2456 = vrot.lane.b32.xlu2 %v2455_v59, %s2638_s17 }
  0x57   : > { %2238 = vmatmul.msk.bf16.gmra.mxu0 %vm648_vm4, %v634_v19  ;;  %v2273_v19 = vld [vmem:[%s4092_s1] sm:$0xf] }
  0x58   : > { %v2274_v23 = vor.u32 %v2320_v20, %v2273_v19 }
  0x5a   : > { %v1571_v34 = vsel %vm1036_vm3, %v2274_v23, 0 }
  0x5b   : > { %1580 = vmatpush.bf16.msra.mxu2 %v1571_v34 }
  0x67   : > { %2239 = vmatmul.msk.bf16.gmra.mxu0 %vm648_vm4, %v635_v36  ;;  %v2465_v36 = vpack.i.bf16 %v1086_v35, %v1084_v32  ;;  %v307_v32 = vld [vmem:[%s2747_s15 + $0xa8] sm:$0xff] }
  0x68   : > { %v385_v37 = vrot.slane %v307_v32, 7 }
  0x69   : > { %2466 = vrot.lane.b32.xlu1 %v2465_v36, %s2638_s17  ;;  %v384_v36 = vrot.slane %v306_v29, 7 }
  0x6a   : > { %v3012_v49 = vsel %vm351_vm0, %v385_v37, 0.0 }
  0x6b   : > { %v3006_v41 = vsel %vm351_vm0, %v384_v36, %v385_v37  ;;  %v3009_v47 = vsel %vm351_vm0, 0.0, %v384_v36  ;;  %v572_v55 = vrot.slane %v3012_v49, 1 }
  0x6c   : > { %v569_v51 = vrot.slane %v3009_v47, 1 }
  0x77   : > { %2240 = vmatmul.msk.bf16.gmra.mxu0 %vm648_vm4, %v636_v3  ;;  %v305_v3 = vld [vmem:[%s2747_s15 + $0x98] sm:$0xff] }
  0x78   : > { %v382_v6 = vrot.slane %v305_v3, 7 }
  0x7a   : > { %v2983_v7 = vsel %vm351_vm0, %v381_v5, %v382_v6  ;;  %v479_v9 = vsel %vm351_vm0, %v382_v6, 0.0 }
  0x7b   : > { %v1088_v11 = vrot.slane %v2983_v7, 2  ;;  %v1090_v17 = vrot.slane %v479_v9, 2 }
  0x7d   : > { %v1091_v21 = vsel %vm1036_vm3, %v1088_v11, %v1090_v17 }
  0x81   : > { %v2392_v40 = vpop.permute.xlu2 %2391 }
  0x82   : > { %v2394_v54 = vunpack.i.h.bf16 %v2392_v40  ;;  %v2393_v56 = vunpack.i.l.bf16 %v2392_v40 }
  0x84   : > { %v1312_v0 = vsel %vm648_vm4, %v2771_v38, %v2394_v54  ;;  %v1311_v46 = vsel %vm648_vm4, %v2766_v33, %v2393_v56  ;;  %v1087_v38 = vrot.slane %v2986_v8, 2  ;;  %v570_v54 = vrot.slane %v3006_v41, 1 }
  0x86   : > { %v1089_v19 = vsel %vm1036_vm3, %v1087_v38, %v1088_v11  ;;  %v3026_v63 = vsel %vm518_vm2, %v569_v51, %v570_v54  ;;  %v3029_v3 = vsel %vm518_vm2, %v570_v54, %v572_v55 }
  0x87   : > { %2241 = vmatmul.msk.bf16.gmra.mxu0 %vm648_vm4, %v637_v48  ;;  %v2475_v22 = vpack.i.bf16 %v1091_v21, %v1089_v19 }
  0x89   : > { %v2397_v1 = vpop.permute.xlu2 %2396  ;;  %2476 = vrot.lane.b32.xlu0 %v2475_v22, %s2638_s17 }
  0x8a   : > { %v2399_v12 = vunpack.i.h.bf16 %v2397_v1  ;;  %v2398_v10 = vunpack.i.l.bf16 %v2397_v1  ;;  %v567_v1 = vrot.slane %v479_v9, 1 }
  0x8c   : > { %v1343_v33 = vsel %vm790_vm5, %v1311_v46, %v2398_v10  ;;  %v1344_v18 = vsel %vm790_vm5, %v1312_v0, %v2399_v12  ;;  %v564_v0 = vrot.slane %v2986_v8, 1  ;;  %v565_v46 = vrot.slane %v2983_v7, 1 }
  0x8d   : > { %v2994_v20 = vpack.c.bf16 %v1344_v18, %v1343_v33  ;;  %v639_v18 = vpack.c.bf16 %v2953_v27, %v2950_v26 }
  0x8e   : > { %v568_v19 = vsel %vm518_vm2, %v565_v46, %v567_v1 }
  0x8f   : > { %2255 = vmatmul.msk.bf16.vlgmr.msra.gmra.mxu1 %vm1421_vm6, %v2994_v20 }
  0x90   : > { %v2372_v23 = vpop.permute.xlu0 %2371 }
  0x91   : > { %v2374_v34 = vunpack.i.h.bf16 %v2372_v23  ;;  %v2373_v35 = vunpack.i.l.bf16 %v2372_v23  ;;  %v308_v23 = vld [vmem:[%s2747_s15 + $0xb0] sm:$0xff] }
  0x92   : > { %v387_v26 = vrot.slane %v308_v23, 7 }
  0x93   : > { %v1310_v52 = vsel %vm648_vm4, %v2725_v2, %v2374_v34  ;;  %v1309_v53 = vsel %vm648_vm4, %v2730_v4, %v2373_v35  ;;  %v2480_v4 = vpack.i.bf16 %v3029_v3, %v3026_v63 }
  0x94   : > { %v3073_v36 = vsel %vm351_vm0, 0.0, %v387_v26 }
  0x95   : > { %2481 = vrot.lane.b32.xlu1 %v2480_v4, %s2637_s16  ;;  %v1097_v54 = vrot.slane %v3073_v36, 2 }
  0x96   : > { %v2382_v39 = vpop.permute.xlu1 %2381 }
  0x97   : > { %2242 = vmatmul.msk.bf16.gmra.mxu0 %vm648_vm4, %v638_v28  ;;  %v2384_v2 = vunpack.i.h.bf16 %v2382_v39  ;;  %v2383_v5 = vunpack.i.l.bf16 %v2382_v39  ;;  %v309_v28 = vld [vmem:[%s2747_s15 + $0xb8] sm:$0xff]  ;;  %v574_v39 = vrot.slane %v3073_v36, 1 }
  0x98   : > { %v2377_v40 = vpop.permute.xlu0 %2376  ;;  %v388_v27 = vrot.slane %v309_v28, 7 }
  0x99   : > { %v2379_v50 = vunpack.i.h.bf16 %v2377_v40  ;;  %v2378_v48 = vunpack.i.l.bf16 %v2377_v40  ;;  %v1314_v38 = vsel %vm648_vm4, %v2759_v30, %v2384_v2  ;;  %v1313_v11 = vsel %vm648_vm4, %v2762_v31, %v2383_v5 }
  0x9a   : > { %v566_v30 = vsel %vm518_vm2, %v564_v0, %v565_v46  ;;  %v3070_v35 = vsel %vm351_vm0, %v387_v26, %v388_v27  ;;  %v481_v37 = vsel %vm351_vm0, %v388_v27, 0.0 }
  0x9b   : > { %v1341_v56 = vsel %vm790_vm5, %v1309_v53, %v2378_v48  ;;  %v1342_v58 = vsel %vm790_vm5, %v1310_v52, %v2379_v50  ;;  %v2470_v22 = vpack.i.bf16 %v568_v19, %v566_v30  ;;  %v575_v48 = vrot.slane %v3070_v35, 1 }
  0x9c   : > { %v3023_v59 = vpack.c.bf16 %v1342_v58, %v1341_v56  ;;  %v577_v51 = vrot.slane %v481_v37, 1  ;;  %v1098_v2 = vrot.slane %v3070_v35, 2  ;;  %v1100_v5 = vrot.slane %v481_v37, 2 }
  0x9d   : > { %2471 = vrot.lane.b32.xlu2 %v2470_v22, %s2637_s16  ;;  %v3086_v56 = vsel %vm518_vm2, %v574_v39, %v575_v48 }
  0x9e   : > { %2275 = vmatmul.msk.bf16.vlgmr.msra.gmra.mxu2 %vm1421_vm6, %v3023_v59  ;;  %v2387_v6 = vpop.permute.xlu1 %2386  ;;  %v3089_v58 = vsel %vm518_vm2, %v575_v48, %v577_v51  ;;  %v1101_v0 = vsel %vm1036_vm3, %v1098_v2, %v1100_v5  ;;  %v641_v5 = vpack.c.bf16 %v3029_v3, %v3026_v63 }
  0x9f   : > { %v2389_v12 = vunpack.i.h.bf16 %v2387_v6  ;;  %v2388_v10 = vunpack.i.l.bf16 %v2387_v6  ;;  %v1099_v6 = vsel %vm1036_vm3, %v1097_v54, %v1098_v2 }
  0xa0   : > { %v2402_v21 = vpop.permute.xlu0 %2401  ;;  %v2495_v46 = vpack.i.bf16 %v1101_v0, %v1099_v6  ;;  %v313_v6 = vld [vmem:[%s2747_s15 + $0xd8] sm:$0xff] }
  0xa1   : > { %v1345_v9 = vsel %vm790_vm5, %v1313_v11, %v2388_v10  ;;  %v1346_v17 = vsel %vm790_vm5, %v1314_v38, %v2389_v12  ;;  %v2404_v29 = vunpack.i.h.bf16 %v2402_v21  ;;  %v2403_v32 = vunpack.i.l.bf16 %v2402_v21 }
  0xa2   : > { %v3050_v33 = vpack.c.bf16 %v1346_v17, %v1345_v9  ;;  %2496 = vrot.lane.b32.xlu1 %v2495_v46, %s2638_s17  ;;  %v1093_v12 = vrot.slane %v3006_v41, 2  ;;  %v1095_v10 = vrot.slane %v3012_v49, 2  ;;  %v640_v38 = vpack.c.bf16 %v568_v19, %v566_v30  ;;  %v2412_v9 = vpop.permute.xlu2 %2411  ;;  %v310_v49 = vld [vmem:[%s2747_s15 + $0xc0] sm:$0xff]  ;;  %v311_v30 = vld [vmem:[%s2747_s15 + $0xc8] sm:$0xff] }
  0xa3   : > { %v1316_v52 = vsel %vm648_vm4, %v2795_v57, %v2404_v29  ;;  %v1315_v53 = vsel %vm648_vm4, %v2802_v60, %v2403_v32  ;;  %v2490_v57 = vpack.i.bf16 %v3089_v58, %v3086_v56  ;;  %v2414_v19 = vunpack.i.h.bf16 %v2412_v9 }
  0xa4   : > { %v3056_v31 = vpop.f32.mrf.mxu0  ;;  %2295 = vmatmul.msk.bf16.vlgmr.msra.gmra.mxu3 %vm1421_vm6, %v3050_v33  ;;  %2256 = vmatmul.msk.bf16.gmra.mxu1 %vm1421_vm6, %v3050_v33  ;;  %v2413_v23 = vunpack.i.l.bf16 %v2412_v9  ;;  %v390_v28 = vrot.slane %v310_v49, 7  ;;  %v391_v26 = vrot.slane %v311_v30, 7  ;;  %v394_v46 = vrot.slane %v313_v6, 7 }
  0xa5   : > { %997 = vst.msk [vmem:[%s3046_s26] sm:$0xff] %vm790_vm5, %v3056_v31  ;;  %2491 = vrot.lane.b32.xlu0 %v2490_v57, %s2637_s16  ;;  %v1318_v48 = vsel %vm648_vm4, %v2814_v15, %v2414_v19 }
  0xa6   : > { %v2407_v34 = vpop.permute.xlu1 %2406  ;;  %v3126_v29 = vsel %vm351_vm0, %v390_v28, %v391_v26  ;;  %v3129_v32 = vsel %vm351_vm0, 0.0, %v390_v28  ;;  %v1317_v51 = vsel %vm648_vm4, %v2817_v16, %v2413_v23 }
  0xa7   : > { %2243 = vmatmul.msk.bf16.gmra.mxu0 %vm648_vm4, %v639_v18  ;;  %v2409_v40 = vunpack.i.h.bf16 %v2407_v34  ;;  %v2408_v50 = vunpack.i.l.bf16 %v2407_v34  ;;  %v1096_v18 = vsel %vm1036_vm3, %v1093_v12, %v1095_v10  ;;  %v482_v34 = vsel %vm351_vm0, %v391_v26, 0.0 }
  0xa8   : > { %v2417_v22 = vpop.permute.xlu0 %2416  ;;  %v1102_v39 = vrot.slane %v3129_v32, 2 }
  0xa9   : > { %v1347_v60 = vsel %vm790_vm5, %v1315_v53, %v2408_v50  ;;  %v1348_v4 = vsel %vm790_vm5, %v1316_v52, %v2409_v40  ;;  %v2419_v27 = vunpack.i.h.bf16 %v2417_v22  ;;  %v2418_v37 = vunpack.i.l.bf16 %v2417_v22 }
  0xaa   : > { %v3104_v1 = vpack.c.bf16 %v1348_v4, %v1347_v60  ;;  %v1103_v40 = vrot.slane %v3126_v29, 2  ;;  %v1105_v50 = vrot.slane %v482_v34, 2  ;;  %v2427_v3 = vpop.permute.xlu2 %2426 }
  0xab   : > { %v1349_v15 = vsel %vm790_vm5, %v1317_v51, %v2418_v37  ;;  %v1350_v57 = vsel %vm790_vm5, %v1318_v48, %v2419_v27  ;;  %v2428_v22 = vunpack.i.l.bf16 %v2427_v3  ;;  %v582_v27 = vrot.slane %v482_v34, 1  ;;  %v314_v34 = vld [vmem:[%s2747_s15 + $0xe0] sm:$0xff] }
  0xac   : > { %v3083_v55 = vpop.f32.mrf.mxu0  ;;  %v1104_v53 = vsel %vm1036_vm3, %v1102_v39, %v1103_v40  ;;  %v1106_v54 = vsel %vm1036_vm3, %v1103_v40, %v1105_v50  ;;  %v3150_v16 = vpack.c.bf16 %v1350_v57, %v1349_v15  ;;  %v579_v37 = vrot.slane %v3129_v32, 1 }
  0xad   : > { %998 = vst.msk [vmem:[%s3046_s26 + $0x8] sm:$0xff] %vm790_vm5, %v3083_v55  ;;  %v2505_v2 = vpack.i.bf16 %v1106_v54, %v1104_v53  ;;  %v580_v39 = vrot.slane %v3126_v29, 1  ;;  %v642_v50 = vpack.c.bf16 %v3089_v58, %v3086_v56  ;;  %v396_v58 = vrot.slane %v314_v34, 7 }
  0xae   : > { %2276 = vmatmul.msk.bf16.gmra.mxu2 %vm1421_vm6, %v2994_v20  ;;  %v1092_v20 = vrot.slane %v3009_v47, 2  ;;  %v2422_v4 = vpop.permute.xlu1 %2421 }
  0xaf   : > { %2506 = vrot.lane.b32.xlu0 %v2505_v2, %s2638_s17  ;;  %v2423_v63 = vunpack.i.l.bf16 %v2422_v4  ;;  %v583_v48 = vsel %vm518_vm2, %v580_v39, %v582_v27  ;;  %v315_v2 = vld [vmem:[%s2747_s15 + $0xe8] sm:$0xff] }
  0xb0   : > { %v1094_v17 = vsel %vm1036_vm3, %v1092_v20, %v1093_v12  ;;  %v2424_v20 = vunpack.i.h.bf16 %v2422_v4  ;;  %v2432_v53 = vpop.permute.xlu0 %2431  ;;  %v397_v15 = vrot.slane %v315_v2, 7 }
  0xb1   : > { %v2485_v21 = vpack.i.bf16 %v1096_v18, %v1094_v17  ;;  %v1319_v30 = vsel %vm648_vm4, %v2844_v42, %v2423_v63  ;;  %v2434_v57 = vunpack.i.h.bf16 %v2432_v53 }
  0xb2   : > { %v1320_v49 = vsel %vm648_vm4, %v2841_v44, %v2424_v20  ;;  %v1351_v44 = vsel %vm790_vm5, %v1319_v30, %v2428_v22  ;;  %v3222_v4 = vsel %vm351_vm0, %v396_v58, %v397_v15  ;;  %v484_v6 = vsel %vm351_vm0, %v397_v15, 0.0 }
  0xb3   : > { %2486 = vrot.lane.b32.xlu2 %v2485_v21, %s2638_s17  ;;  %v2429_v21 = vunpack.i.h.bf16 %v2427_v3  ;;  %v590_v20 = vrot.slane %v3222_v4, 1  ;;  %v592_v63 = vrot.slane %v484_v6, 1 }
  0xb4   : > { %v3110_v11 = vpop.f32.mrf.mxu0  ;;  %2257 = vmatmul.msk.bf16.gmra.mxu1 %vm1421_vm6, %v3104_v1  ;;  %2296 = vmatmul.msk.bf16.gmra.mxu3 %vm1421_vm6, %v3104_v1 }
  0xb5   : > { %999 = vst.msk [vmem:[%s3046_s26 + $0x10] sm:$0xff] %vm790_vm5, %v3110_v11  ;;  %v1352_v42 = vsel %vm790_vm5, %v1320_v49, %v2429_v21  ;;  %v1322_v21 = vsel %vm648_vm4, %v2859_v61, %v2434_v57  ;;  %v3240_v30 = vsel %vm518_vm2, %v590_v20, %v592_v63 }
  0xb6   : > { %v3202_v40 = vpack.c.bf16 %v1352_v42, %v1351_v44  ;;  %v2437_v56 = vpop.permute.xlu1 %2436 }
  0xb7   : > { %2244 = vmatmul.msk.bf16.gmra.mxu0 %vm648_vm4, %v640_v38  ;;  %v3173_v38 = vsel %vm351_vm0, %v394_v46, 0.0  ;;  %v2438_v3 = vunpack.i.l.bf16 %v2437_v56 }
  0xb8   : > { %v587_v18 = vrot.slane %v3173_v38, 1  ;;  %v2447_v57 = vpop.permute.xlu0 %2446 }
  0xbc   : > { %v3138_v52 = vpop.f32.mrf.mxu0 }
  0xbd   : > { %1000 = vst.msk [vmem:[%s3046_s26 + $0x18] sm:$0xff] %vm790_vm5, %v3138_v52 }
  0xbe   : > { %2277 = vmatmul.msk.bf16.gmra.mxu2 %vm1421_vm6, %v3050_v33  ;;  %v312_v33 = vld [vmem:[%s2747_s15 + $0xd0] sm:$0xff] }
  0xbf   : > { %v393_v0 = vrot.slane %v312_v33, 7  ;;  %v3225_v33 = vsel %vm351_vm0, 0.0, %v396_v58 }
  0xc1   : > { %v3167_v12 = vsel %vm351_vm0, %v393_v0, %v394_v46  ;;  %v3170_v10 = vsel %vm351_vm0, 0.0, %v393_v0  ;;  %v2439_v0 = vunpack.i.h.bf16 %v2437_v56  ;;  %v589_v46 = vrot.slane %v3225_v33, 1 }
  0xc2   : > { %v584_v9 = vrot.slane %v3170_v10, 1  ;;  %v585_v17 = vrot.slane %v3167_v12, 1 }
  0xc3   : > { %v3237_v49 = vsel %vm518_vm2, %v589_v46, %v590_v20  ;;  %v2449_v46 = vunpack.i.h.bf16 %v2447_v57 }
  0xc4   : > { %v3154_v60 = vpop.f32.mrf.mxu0  ;;  %2258 = vmatmul.msk.bf16.gmra.mxu1 %vm1421_vm6, %v3150_v16  ;;  %2297 = vmatmul.msk.bf16.gmra.mxu3 %vm1421_vm6, %v3150_v16  ;;  %v3183_v19 = vsel %vm518_vm2, %v584_v9, %v585_v17  ;;  %v3186_v23 = vsel %vm518_vm2, %v585_v17, %v587_v18  ;;  %v1112_v9 = vrot.slane %v3225_v33, 2  ;;  %v1113_v17 = vrot.slane %v3222_v4, 2 }
  0xc5   : > { %1001 = vst.msk [vmem:[%s3046_s26 + $0x20] sm:$0xff] %vm790_vm5, %v3154_v60  ;;  %v2510_v26 = vpack.i.bf16 %v3186_v23, %v3183_v19  ;;  %v1115_v18 = vrot.slane %v484_v6, 2  ;;  %v2520_v44 = vpack.i.bf16 %v3240_v30, %v3237_v49  ;;  %v317_v6 = vld [vmem:[%s2747_s15 + $0xf8] sm:$0xff] }
  0xc6   : > { %v1114_v42 = vsel %vm1036_vm3, %v1112_v9, %v1113_v17  ;;  %v2448_v9 = vunpack.i.l.bf16 %v2447_v57 }
  0xc7   : > { %2245 = vmatmul.msk.bf16.gmra.mxu0 %vm648_vm4, %v641_v5  ;;  %2511 = vrot.lane.b32.xlu1 %v2510_v26, %s2637_s16  ;;  %v2433_v5 = vunpack.i.l.bf16 %v2432_v53  ;;  %v1116_v27 = vsel %vm1036_vm3, %v1113_v17, %v1115_v18  ;;  %v1108_v53 = vrot.slane %v3167_v12, 2 }
  0xc8   : > { %v2525_v61 = vpack.i.bf16 %v1116_v27, %v1114_v42  ;;  %2521 = vrot.lane.b32.xlu0 %v2520_v44, %s2637_s16 }
  0xc9   : > { %v1321_v22 = vsel %vm648_vm4, %v2862_v62, %v2433_v5  ;;  %v316_v5 = vld [vmem:[%s2747_s15 + $0xf0] sm:$0xff] }
  0xca   : > { %v1353_v62 = vsel %vm790_vm5, %v1321_v22, %v2438_v3 }
  0xcc   : > { %v3188_v28 = vpop.f32.mrf.mxu0 }
  0xcd   : > { %1002 = vst.msk [vmem:[%s3046_s26 + $0x28] sm:$0xff] %vm790_vm5, %v3188_v28 }
  0xce   : > { %2278 = vmatmul.msk.bf16.gmra.mxu2 %vm1421_vm6, %v3104_v1  ;;  %v581_v1 = vsel %vm518_vm2, %v579_v37, %v580_v39  ;;  %v1354_v37 = vsel %vm790_vm5, %v1322_v21, %v2439_v0  ;;  %v400_v0 = vrot.slane %v317_v6, 7 }
  0xcf   : > { %v2500_v54 = vpack.i.bf16 %v583_v48, %v581_v1  ;;  %2526 = vrot.lane.b32.xlu1 %v2525_v61, %s2638_s17  ;;  %v1379_v39 = vpack.c.bf16 %v1354_v37, %v1353_v62  ;;  %v643_v34 = vpack.c.bf16 %v583_v48, %v581_v1  ;;  %v399_v48 = vrot.slane %v316_v5, 7 }
  0xd0   : > { %v485_v3 = vsel %vm351_vm0, %v400_v0, 0.0 }
  0xd1   : > { %2501 = vrot.lane.b32.xlu2 %v2500_v54, %s2637_s16  ;;  %v1110_v54 = vrot.slane %v3173_v38, 2  ;;  %v3274_v20 = vsel %vm351_vm0, %v399_v48, %v400_v0  ;;  %v3277_v63 = vsel %vm351_vm0, 0.0, %v399_v48  ;;  %v1394_v21 = vrot.slane %v485_v3, 2 }
  0xd2   : > { %v1391_v17 = vrot.slane %v3277_v63, 2  ;;  %v1392_v18 = vrot.slane %v3274_v20, 2  ;;  %v597_v6 = vrot.slane %v485_v3, 1 }
  0xd3   : > { %v1111_v58 = vsel %vm1036_vm3, %v1108_v53, %v1110_v54  ;;  %v2452_v54 = vpop.permute.xlu1 %2451 }
  0xd4   : > { %v3208_v51 = vpop.f32.mrf.mxu0  ;;  %2259 = vmatmul.msk.bf16.gmra.mxu1 %vm1421_vm6, %v3202_v40  ;;  %2298 = vmatmul.msk.bf16.gmra.mxu3 %vm1421_vm6, %v3202_v40  ;;  %v1393_v27 = vsel %vm1036_vm3, %v1391_v17, %v1392_v18  ;;  %v1395_v61 = vsel %vm1036_vm3, %v1392_v18, %v1394_v21 }
  0xd5   : > { %1003 = vst.msk [vmem:[%s3046_s26 + $0x30] sm:$0xff] %vm790_vm5, %v3208_v51  ;;  %v2535_v62 = vpack.i.bf16 %v1395_v61, %v1393_v27 }
  0xd7   : > { %2246 = vmatmul.msk.bf16.gmra.mxu0 %vm648_vm4, %v642_v50  ;;  %v1107_v50 = vrot.slane %v3170_v10, 2  ;;  %2536 = vrot.lane.b32.xlu0 %v2535_v62, %s2638_s17 }
  0xd9   : > { %v1109_v56 = vsel %vm1036_vm3, %v1107_v50, %v1108_v53  ;;  %v644_v50 = vpack.c.bf16 %v3186_v23, %v3183_v19 }
  0xda   : > { %v2515_v15 = vpack.i.bf16 %v1111_v58, %v1109_v56 }
  0xdb   : > { %v2467_v3 = vpop.permute.xlu1 %2466 }
  0xdc   : > { %v3242_v26 = vpop.f32.mrf.mxu0  ;;  %2516 = vrot.lane.b32.xlu2 %v2515_v15, %s2638_s17  ;;  %v2469_v17 = vunpack.i.h.bf16 %v2467_v3  ;;  %v2468_v18 = vunpack.i.l.bf16 %v2467_v3  ;;  %s3378_s17 = scalar_lea.vmem %s4094_s3, %s2739_s12  ;;  %s3872_s12 = sand.u32 1, %s2626_s22  }
  0xdd   : > { %1004 = vst.msk [vmem:[%s3046_s26 + $0x38] sm:$0xff] %vm790_vm5, %v3242_v26  ;;  %s2227_s28 = sshll.u32 %s3872_s12, 1  ;;  %s2046_s19 = scalar_lea.sflag [#allocation5], %s3872_s12 }
  0xde   : > { %2279 = vmatmul.msk.bf16.gmra.mxu2 %vm1421_vm6, %v3150_v16  ;;  %v2442_v16 = vpop.permute.xlu2 %2441  ;;  %s269_s29 = scalar_lea.vmem [#allocation4], %s2227_s28 }
  0xdf   : > { %v2444_v38 = vunpack.i.h.bf16 %v2442_v16  ;;  %v2443_v1 = vunpack.i.l.bf16 %v2442_v16  ;;  %s2078_s14 = sshll.u32 %s269_s29, 4  ;;  %s2079_s14 = int_to_ptr.vmem [resolvable:$true] %s2078_s14 }
  0xe1   : > { %v1324_v22 = vsel %vm648_vm4, %v2882_v24, %v2444_v38  ;;  %v1323_v44 = vsel %vm648_vm4, %v2885_v25, %v2443_v1  ;;  %v594_v38 = vrot.slane %v3277_v63, 1 }
  0xe2   : > { %v1355_v37 = vsel %vm790_vm5, %v1323_v44, %v2448_v9  ;;  %v1356_v24 = vsel %vm790_vm5, %v1324_v22, %v2449_v46 }
  0xe3   : > { %v1380_v25 = vpack.c.bf16 %v1356_v24, %v1355_v37 }
  0xe4   : > { %v3260_v2 = vpop.f32.mrf.mxu0  ;;  %2260 = vmatmul.msk.bf16.gmra.mxu1 %vm1421_vm6, %v1379_v39  ;;  %2299 = vmatmul.msk.bf16.gmra.mxu3 %vm1421_vm6, %v1379_v39 }
  0xe5   : > { %1005 = vst.msk [vmem:[%s3046_s26 + $0x40] sm:$0xff] %vm790_vm5, %v3260_v2 }
  0xe6   : > { %v2457_v16 = vpop.permute.xlu2 %2456 }
  0xe7   : > { %2247 = vmatmul.msk.bf16.gmra.mxu0 %vm648_vm4, %v643_v34  ;;  %v2453_v34 = vunpack.i.l.bf16 %v2452_v54  ;;  %v2459_v56 = vunpack.i.h.bf16 %v2457_v16  ;;  %v2458_v58 = vunpack.i.l.bf16 %v2457_v16 }
  0xe9   : > { %v1325_v23 = vsel %vm648_vm4, %v2900_v45, %v2453_v34  ;;  %v645_v45 = vpack.c.bf16 %v3240_v30, %v3237_v49 }
  0xea   : > { %v1357_v57 = vsel %vm790_vm5, %v1325_v23, %v2458_v58 }
  0xec   : > { %v3286_v42 = vpop.f32.mrf.mxu0 }
  0xed   : > { %1006 = vst.msk [vmem:[%s3046_s26 + $0x48] sm:$0xff] %vm790_vm5, %v3286_v42 }
  0xee   : > { %2280 = vmatmul.msk.bf16.gmra.mxu2 %vm1421_vm6, %v3202_v40  ;;  %v2454_v40 = vunpack.i.h.bf16 %v2452_v54 }
  0xf0   : > { %v1326_v19 = vsel %vm648_vm4, %v2897_v43, %v2454_v40  ;;  %v595_v43 = vrot.slane %v3274_v20, 1 }
  0xf1   : > { %v1358_v5 = vsel %vm790_vm5, %v1326_v19, %v2459_v56 }
  0xf2   : > { %v1381_v1 = vpack.c.bf16 %v1358_v5, %v1357_v57  ;;  %v596_v48 = vsel %vm518_vm2, %v594_v38, %v595_v43  ;;  %v598_v0 = vsel %vm518_vm2, %v595_v43, %v597_v6 }
  0xf3   : > { %v2530_v9 = vpack.i.bf16 %v598_v0, %v596_v48  ;;  %v646_v24 = vpack.c.bf16 %v598_v0, %v596_v48 }
  0xf4   : > { %v3300_v53 = vpop.f32.mrf.mxu0  ;;  %2261 = vmatmul.msk.bf16.gmra.mxu1 %vm1421_vm6, %v1380_v25  ;;  %2300 = vmatmul.msk.bf16.gmra.mxu3 %vm1421_vm6, %v1380_v25 }
  0xf5   : > { %1007 = vst.msk [vmem:[%s3046_s26 + $0x50] sm:$0xff] %vm790_vm5, %v3300_v53  ;;  %2531 = vrot.lane.b32.xlu2 %v2530_v9, %s2637_s16 }
  0xf7   : > { %2248 = vmatmul.msk.bf16.gmra.mxu0 %vm648_vm4, %v644_v50 }
  0xfc   : > { %v3312_v15 = vpop.f32.mrf.mxu0 }
  0xfd   : > { %1008 = vst.msk [vmem:[%s3046_s26 + $0x58] sm:$0xff] %vm790_vm5, %v3312_v15 }
  0xfe   : > { %2281 = vmatmul.msk.bf16.gmra.mxu2 %vm1421_vm6, %v1379_v39  ;;  %v2462_v39 = vpop.permute.xlu0 %2461 }
  0xff   : > { %v2464_v49 = vunpack.i.h.bf16 %v2462_v39  ;;  %v2463_v30 = vunpack.i.l.bf16 %v2462_v39 }
 0x101   : > { %v1328_v21 = vsel %vm648_vm4, %v2933_v13, %v2464_v49  ;;  %v1327_v22 = vsel %vm648_vm4, %v2936_v14, %v2463_v30  ;;  %v2472_v13 = vpop.permute.xlu2 %2471 }
 0x102   : > { %v1359_v61 = vsel %vm790_vm5, %v1327_v22, %v2468_v18  ;;  %v1360_v62 = vsel %vm790_vm5, %v1328_v21, %v2469_v17  ;;  %v2474_v14 = vunpack.i.h.bf16 %v2472_v13 }
 0x103   : > { %v1382_v37 = vpack.c.bf16 %v1360_v62, %v1359_v61 }
 0x104   : > { %v3326_v46 = vpop.f32.mrf.mxu0  ;;  %2262 = vmatmul.msk.bf16.gmra.mxu1 %vm1421_vm6, %v1381_v1  ;;  %2301 = vmatmul.msk.bf16.gmra.mxu3 %vm1421_vm6, %v1381_v1  ;;  %v1330_v56 = vsel %vm648_vm4, %v2983_v7, %v2474_v14 }
 0x105   : > { %1009 = vst.msk [vmem:[%s3046_s26 + $0x60] sm:$0xff] %vm790_vm5, %v3326_v46 }
 0x106   : > { %v2477_v54 = vpop.permute.xlu0 %2476 }
 0x107   : > { %2249 = vmatmul.msk.bf16.gmra.mxu0 %vm648_vm4, %v645_v45  ;;  %v2479_v34 = vunpack.i.h.bf16 %v2477_v54  ;;  %v2478_v16 = vunpack.i.l.bf16 %v2477_v54  ;;  %v2482_v7 = vpop.permute.xlu1 %2481  ;;  %v792_v54 = vsel %vm790_vm5, %v3083_v55, 0.0 }
 0x108   : > { %v2483_v45 = vunpack.i.l.bf16 %v2482_v7 }
 0x109   : > { %v1362_v57 = vsel %vm790_vm5, %v1330_v56, %v2479_v34 }
 0x10a   : > { %v1331_v18 = vsel %vm648_vm4, %v3009_v47, %v2483_v45 }
 0x10c   : > { %v3339_v44 = vpop.f32.mrf.mxu0  ;;  %v1482_v27 = vpop.f32.mrf.mxu1 }
 0x10d   : > { %1010 = vst.msk [vmem:[%s3046_s26 + $0x68] sm:$0xff] %vm790_vm5, %v3339_v44  ;;  %v2487_v48 = vpop.permute.xlu2 %2486 }
 0x10e   : > { %2282 = vmatmul.msk.bf16.gmra.mxu2 %vm1421_vm6, %v1380_v25  ;;  %v2473_v25 = vunpack.i.l.bf16 %v2472_v13  ;;  %v2489_v30 = vunpack.i.h.bf16 %v2487_v48  ;;  %v2488_v3 = vunpack.i.l.bf16 %v2487_v48 }
 0x110   : > { %v1329_v58 = vsel %vm648_vm4, %v2986_v8, %v2473_v25  ;;  %v1363_v22 = vsel %vm790_vm5, %v1331_v18, %v2488_v3 }
 0x111   : > { %v1361_v23 = vsel %vm790_vm5, %v1329_v58, %v2478_v16 }
 0x112   : > { %v1383_v6 = vpack.c.bf16 %v1362_v57, %v1361_v23  ;;  %v794_v57 = vsel %vm790_vm5, %v3110_v11, 0.0 }
 0x114   : > { %v3347_v50 = vpop.f32.mrf.mxu0  ;;  %2263 = vmatmul.msk.bf16.gmra.mxu1 %vm1421_vm6, %v1382_v37  ;;  %2302 = vmatmul.msk.bf16.gmra.mxu3 %vm1421_vm6, %v1382_v37  ;;  %v1484_v40 = vpop.f32.mrf.mxu1 }
 0x115   : > { %1011 = vst.msk [vmem:[%s3046_s26 + $0x70] sm:$0xff] %vm790_vm5, %v3347_v50  ;;  %v2497_v56 = vpop.permute.xlu1 %2496 }
 0x116   : > { %v2498_v45 = vunpack.i.l.bf16 %v2497_v56 }
 0x117   : > { %2250 = vmatmul.msk.bf16.gmra.mxu0 %vm648_vm4, %v646_v24  ;;  %v2492_v25 = vpop.permute.xlu0 %2491 }
 0x118   : > { %v2494_v34 = vunpack.i.h.bf16 %v2492_v25  ;;  %v2493_v16 = vunpack.i.l.bf16 %v2492_v25 }
 0x11a   : > { %v1333_v48 = vsel %vm648_vm4, %v3073_v36, %v2493_v16 }
 0x11b   : > { %v1365_v3 = vsel %vm790_vm5, %v1333_v48, %v2498_v45 }
 0x11c   : > { %v3359_v19 = vpop.f32.mrf.mxu0 }
 0x11d   : > { %1012 = vst.msk [vmem:[%s3046_s26 + $0x78] sm:$0xff] %vm790_vm5, %v3359_v19 }
 0x11e   : > { %2283 = vmatmul.msk.bf16.gmra.mxu2 %vm1421_vm6, %v1381_v1  ;;  %v2484_v1 = vunpack.i.h.bf16 %v2482_v7 }
 0x120   : > { %v1332_v17 = vsel %vm648_vm4, %v3006_v41, %v2484_v1  ;;  %v2499_v1 = vunpack.i.h.bf16 %v2497_v56 }
 0x121   : > { %v1582_v5 = vpop.f32.mrf.mxu2  ;;  %v1487_v38 = vpop.f32.mrf.mxu1 }
 0x122   : > { %v1583_v8 = vadd.f32 %v1582_v5, %v1482_v27  ;;  %v1364_v27 = vsel %vm790_vm5, %v1332_v17, %v2489_v30  ;;  %v796_v30 = vsel %vm790_vm5, %v3138_v52, 0.0  ;;  %v2507_v16 = vpop.permute.xlu0 %2506 }
 0x123   : > { %v3399_v13 = vpack.c.bf16 %v1364_v27, %v1363_v22  ;;  %v798_v22 = vsel %vm790_vm5, %v3154_v60, 0.0  ;;  %v2509_v45 = vunpack.i.h.bf16 %v2507_v16 }
 0x124   : > { %v3367_v43 = vpop.f32.mrf.mxu0  ;;  %2264 = vmatmul.msk.bf16.gmra.mxu1 %vm1421_vm6, %v1383_v6  ;;  %2303 = vmatmul.msk.bf16.gmra.mxu3 %vm1421_vm6, %v1383_v6 }
 0x125   : > { %1013 = vst.msk [vmem:[%s3046_s26 + $0x80] sm:$0xff] %vm790_vm5, %v3367_v43 }
 0x127   : > { %v1681_v0 = vpop.f32.mrf.mxu3 }
 0x128   : > { %v3380_v39 = vadd.f32 %v1681_v0, %v1583_v8 }
 0x129   : > { %v1584_v9 = vpop.f32.mrf.mxu2  ;;  %v1489_v49 = vpop.f32.mrf.mxu1 }
 0x12a   : > { %1998 = vst.msk [vmem:[%s3378_s17] sm:$0xff] %vm790_vm5, %v3380_v39  ;;  %v1585_v61 = vadd.f32 %v1584_v9, %v1484_v40 }
 0x12c   : > { %v3389_v21 = vpop.f32.mrf.mxu0 }
 0x12d   : > { %1014 = vst.msk [vmem:[%s3046_s26 + $0x88] sm:$0xff] %vm790_vm5, %v3389_v21 }
 0x12e   : > { %2284 = vmatmul.msk.bf16.gmra.mxu2 %vm1421_vm6, %v1382_v37  ;;  %v791_v37 = vsel %vm790_vm5, %v3056_v31, 0.0 }
 0x12f   : > { %v1683_v62 = vpop.f32.mrf.mxu3  ;;  %v793_v58 = vadd.f32 %v792_v54, %v791_v37  ;;  %v2502_v37 = vpop.permute.xlu2 %2501 }
 0x130   : > { %v3397_v24 = vadd.f32 %v1683_v62, %v1585_v61 }
 0x131   : > { %v1587_v41 = vpop.f32.mrf.mxu2  ;;  %v1492_v47 = vpop.f32.mrf.mxu1  ;;  %v795_v0 = vadd.f32 %v794_v57, %v793_v58 }
 0x132   : > { %1999 = vst.msk [vmem:[%s3378_s17 + $0x8] sm:$0xff] %vm790_vm5, %v3397_v24  ;;  %v1588_v40 = vadd.f32 %v1587_v41, %v1487_v38  ;;  %v1334_v38 = vsel %vm648_vm4, %v3070_v35, %v2494_v34  ;;  %v2503_v34 = vunpack.i.l.bf16 %v2502_v37 }
 0x133   : > { %v1366_v35 = vsel %vm790_vm5, %v1334_v38, %v2499_v1  ;;  %v797_v18 = vadd.f32 %v796_v30, %v795_v0  ;;  %v2508_v38 = vunpack.i.l.bf16 %v2507_v16 }
 0x134   : > { %v3404_v14 = vpop.f32.mrf.mxu0  ;;  %2265 = vmatmul.msk.bf16.gmra.mxu1 %vm1421_vm6, %v3399_v13  ;;  %2304 = vmatmul.msk.bf16.gmra.mxu3 %vm1421_vm6, %v3399_v13  ;;  %v3442_v62 = vpack.c.bf16 %v1366_v35, %v1365_v3  ;;  %v1335_v48 = vsel %vm648_vm4, %v3129_v32, %v2503_v34  ;;  %v804_v3 = vsel %vm790_vm5, %v3242_v26, 0.0 }
 0x135   : > { %1015 = vst.msk [vmem:[%s3046_s26 + $0x90] sm:$0xff] %vm790_vm5, %v3404_v14  ;;  %v1367_v35 = vsel %vm790_vm5, %v1335_v48, %v2508_v38 }
 0x137   : > { %v1686_v23 = vpop.f32.mrf.mxu3 }
 0x138   : > { %v3419_v5 = vadd.f32 %v1686_v23, %v1588_v40  ;;  %v2504_v40 = vunpack.i.h.bf16 %v2502_v37  ;;  %v802_v23 = vsel %vm790_vm5, %v3208_v51, 0.0 }
 0x139   : > { %v1589_v7 = vpop.f32.mrf.mxu2  ;;  %v1494_v8 = vpop.f32.mrf.mxu1 }
 0x13a   : > { %2000 = vst.msk [vmem:[%s3378_s17 + $0x10] sm:$0xff] %vm790_vm5, %v3419_v5  ;;  %v1590_v17 = vadd.f32 %v1589_v7, %v1489_v49  ;;  %v800_v49 = vsel %vm790_vm5, %v3188_v28, 0.0 }
 0x13c   : > { %v3428_v9 = vpop.f32.mrf.mxu0 }
 0x13d   : > { %1016 = vst.msk [vmem:[%s3046_s26 + $0x98] sm:$0xff] %vm790_vm5, %v3428_v9 }
 0x13e   : > { %2285 = vmatmul.msk.bf16.gmra.mxu2 %vm1421_vm6, %v1383_v6  ;;  %v799_v6 = vadd.f32 %v798_v22, %v797_v18 }
 0x13f   : > { %v1688_v36 = vpop.f32.mrf.mxu3 }
 0x140   : > { %v3440_v27 = vadd.f32 %v1688_v36, %v1590_v17  ;;  %v801_v56 = vadd.f32 %v800_v49, %v799_v6  ;;  %v806_v36 = vsel %vm790_vm5, %v3260_v2, 0.0 }
 0x141   : > { %v1592_v61 = vpop.f32.mrf.mxu2  ;;  %v1497_v41 = vpop.f32.mrf.mxu1 }
 0x142   : > { %2001 = vst.msk [vmem:[%s3378_s17 + $0x18] sm:$0xff] %vm790_vm5, %v3440_v27  ;;  %v1593_v54 = vadd.f32 %v1592_v61, %v1492_v47  ;;  %v1336_v47 = vsel %vm648_vm4, %v3126_v29, %v2504_v40  ;;  %v803_v0 = vadd.f32 %v802_v23, %v801_v56  ;;  %v2512_v40 = vpop.permute.xlu1 %2511  ;;  %v2517_v56 = vpop.permute.xlu2 %2516 }
 0x143   : > { %v1368_v17 = vsel %vm790_vm5, %v1336_v47, %v2509_v45  ;;  %v2514_v34 = vunpack.i.h.bf16 %v2512_v40  ;;  %v2513_v16 = vunpack.i.l.bf16 %v2512_v40  ;;  %v2519_v48 = vunpack.i.h.bf16 %v2517_v56 }
 0x144   : > { %v3447_v25 = vpop.f32.mrf.mxu0  ;;  %2266 = vmatmul.msk.bf16.gmra.mxu1 %vm1421_vm6, %v3442_v62  ;;  %2305 = vmatmul.msk.bf16.gmra.mxu3 %vm1421_vm6, %v3442_v62  ;;  %v805_v32 = vadd.f32 %v804_v3, %v803_v0  ;;  %v3482_v22 = vpack.c.bf16 %v1368_v17, %v1367_v35  ;;  %v2518_v0 = vunpack.i.l.bf16 %v2517_v56  ;;  %v2522_v56 = vpop.permute.xlu0 %2521 }
 0x145   : > { %1017 = vst.msk [vmem:[%s3046_s26 + $0xa0] sm:$0xff] %vm790_vm5, %v3447_v25  ;;  %v1337_v3 = vsel %vm648_vm4, %v3170_v10, %v2513_v16 }
 0x146   : > { %v807_v49 = vadd.f32 %v806_v36, %v805_v32 }
 0x147   : > { %v1691_v58 = vpop.f32.mrf.mxu3 }
 0x148   : > { %v3460_v57 = vadd.f32 %v1691_v58, %v1593_v54 }
 0x149   : > { %v1594_v7 = vpop.f32.mrf.mxu2  ;;  %v1499_v1 = vpop.f32.mrf.mxu1 }
 0x14a   : > { %2002 = vst.msk [vmem:[%s3378_s17 + $0x20] sm:$0xff] %vm790_vm5, %v3460_v57  ;;  %v1595_v29 = vadd.f32 %v1594_v7, %v1494_v8  ;;  %v810_v7 = vsel %vm790_vm5, %v3300_v53, 0.0 }
 0x14c   : > { %v3469_v30 = vpop.f32.mrf.mxu0 }
 0x14d   : > { %1018 = vst.msk [vmem:[%s3046_s26 + $0xa8] sm:$0xff] %vm790_vm5, %v3469_v30 }
 0x14e   : > { %2286 = vmatmul.msk.bf16.gmra.mxu2 %vm1421_vm6, %v3399_v13  ;;  %v808_v13 = vsel %vm790_vm5, %v3286_v42, 0.0 }
 0x14f   : > { %v1693_v18 = vpop.f32.mrf.mxu3  ;;  %v809_v58 = vadd.f32 %v808_v13, %v807_v49 }
 0x150   : > { %v3484_v61 = vadd.f32 %v1693_v18, %v1595_v29  ;;  %v812_v29 = vsel %vm790_vm5, %v3312_v15, 0.0  ;;  %v1369_v18 = vsel %vm790_vm5, %v1337_v3, %v2518_v0  ;;  %v818_v0 = vsel %vm790_vm5, %v3347_v50, 0.0 }
 0x151   : > { %v1597_v6 = vpop.f32.mrf.mxu2  ;;  %v1502_v37 = vpop.f32.mrf.mxu1  ;;  %v811_v35 = vadd.f32 %v810_v7, %v809_v58  ;;  %v2524_v58 = vunpack.i.h.bf16 %v2522_v56 }
 0x152   : > { %2003 = vst.msk [vmem:[%s3378_s17 + $0x28] sm:$0xff] %vm790_vm5, %v3484_v61  ;;  %v1598_v8 = vadd.f32 %v1597_v6, %v1497_v41  ;;  %v1338_v41 = vsel %vm648_vm4, %v3167_v12, %v2514_v34  ;;  %v814_v6 = vsel %vm790_vm5, %v3326_v46, 0.0  ;;  %v2527_v7 = vpop.permute.xlu1 %2526 }
 0x153   : > { %v1370_v32 = vsel %vm790_vm5, %v1338_v41, %v2519_v48  ;;  %v813_v10 = vadd.f32 %v812_v29, %v811_v35  ;;  %v2529_v29 = vunpack.i.h.bf16 %v2527_v7 }
 0x154   : > { %v3489_v54 = vpop.f32.mrf.mxu0  ;;  %2267 = vmatmul.msk.bf16.gmra.mxu1 %vm1421_vm6, %v3482_v22  ;;  %2306 = vmatmul.msk.bf16.gmra.mxu3 %vm1421_vm6, %v3482_v22  ;;  %v3524_v49 = vpack.c.bf16 %v1370_v32, %v1369_v18  ;;  %v2528_v32 = vunpack.i.l.bf16 %v2527_v7 }
 0x155   : > { %1019 = vst.msk [vmem:[%s3046_s26 + $0xb0] sm:$0xff] %vm790_vm5, %v3489_v54  ;;  %v815_v34 = vadd.f32 %v814_v6, %v813_v10 }
 0x157   : > { %v1696_v23 = vpop.f32.mrf.mxu3 }
 0x158   : > { %v3502_v45 = vadd.f32 %v1696_v23, %v1598_v8  ;;  %v2523_v23 = vunpack.i.l.bf16 %v2522_v56  ;;  %v822_v56 = vsel %vm790_vm5, %v3367_v43, 0.0 }
 0x159   : > { %v1599_v38 = vpop.f32.mrf.mxu2  ;;  %v1504_v47 = vpop.f32.mrf.mxu1 }
 0x15a   : > { %2004 = vst.msk [vmem:[%s3378_s17 + $0x30] sm:$0xff] %vm790_vm5, %v3502_v45  ;;  %v1600_v12 = vadd.f32 %v1599_v38, %v1499_v1  ;;  %v1339_v18 = vsel %vm648_vm4, %v3225_v33, %v2523_v23 }
 0x15c   : > { %v3511_v17 = vpop.f32.mrf.mxu0 }
 0x15d   : > { %1020 = vst.msk [vmem:[%s3046_s26 + $0xb8] sm:$0xff] %vm790_vm5, %v3511_v17 }
 0x15e   : > { %2287 = vmatmul.msk.bf16.gmra.mxu2 %vm1421_vm6, %v3442_v62  ;;  %v816_v62 = vsel %vm790_vm5, %v3339_v44, 0.0 }
 0x15f   : > { %v1698_v36 = vpop.f32.mrf.mxu3  ;;  %v817_v38 = vadd.f32 %v816_v62, %v815_v34 }
 0x160   : > { %v3526_v40 = vadd.f32 %v1698_v36, %v1600_v12  ;;  %v820_v36 = vsel %vm790_vm5, %v3359_v19, 0.0 }
 0x161   : > { %v1602_v13 = vpop.f32.mrf.mxu2  ;;  %v1507_v8 = vpop.f32.mrf.mxu1  ;;  %v819_v12 = vadd.f32 %v818_v0, %v817_v38 }
 0x162   : > { %2005 = vst.msk [vmem:[%s3378_s17 + $0x38] sm:$0xff] %vm790_vm5, %v3526_v40  ;;  %v1603_v1 = vadd.f32 %v1602_v13, %v1502_v37  ;;  %v1340_v37 = vsel %vm648_vm4, %v3222_v4, %v2524_v58  ;;  %v1371_v13 = vsel %vm790_vm5, %v1339_v18, %v2528_v32  ;;  %v826_v18 = vsel %vm790_vm5, %v3404_v14, 0.0 }
 0x163   : > { %v1372_v6 = vsel %vm790_vm5, %v1340_v37, %v2529_v29  ;;  %v821_v33 = vadd.f32 %v820_v36, %v819_v12  ;;  %v2537_v29 = vpop.permute.xlu0 %2536 }
 0x164   : > { %v3531_v16 = vpop.f32.mrf.mxu0  ;;  %2268 = vmatmul.msk.bf16.gmra.mxu1 %vm1421_vm6, %v3524_v49  ;;  %2307 = vmatmul.msk.bf16.gmra.mxu3 %vm1421_vm6, %v3524_v49  ;;  %v3566_v62 = vpack.c.bf16 %v1372_v6, %v1371_v13  ;;  %v2539_v13 = vunpack.i.h.bf16 %v2537_v29 }
 0x165   : > { %1021 = vst.msk [vmem:[%s3046_s26 + $0xc0] sm:$0xff] %vm790_vm5, %v3531_v16  ;;  %v823_v7 = vadd.f32 %v822_v56, %v821_v33 }
 0x167   : > { %v1701_v48 = vpop.f32.mrf.mxu3 }
 0x168   : > { %v3544_v41 = vadd.f32 %v1701_v48, %v1603_v1  ;;  %v2532_v48 = vpop.permute.xlu2 %2531 }
 0x169   : > { %v1604_v3 = vpop.f32.mrf.mxu2  ;;  %v1509_v35 = vpop.f32.mrf.mxu1  ;;  %v2534_v0 = vunpack.i.h.bf16 %v2532_v48 }
 0x16a   : > { %4119 = vst [vmem:[#allocation8_spill] sm:$0xff] %v3544_v41  ;;  %v1605_v4 = vadd.f32 %v1604_v3, %v1504_v47  ;;  %v2533_v3 = vunpack.i.l.bf16 %v2532_v48 }
 0x16b   : > { %2006 = vst.msk [vmem:[%s3378_s17 + $0x40] sm:$0xff] %vm790_vm5, %v3544_v41 }
 0x16c   : > { %v3553_v10 = vpop.f32.mrf.mxu0  ;;  %v1408_v33 = vsel %vm648_vm4, %v3277_v63, %v2533_v3 }
 0x16d   : > { %1022 = vst.msk [vmem:[%s3046_s26 + $0xc8] sm:$0xff] %vm790_vm5, %v3553_v10 }
 0x16e   : > { %2288 = vmatmul.msk.bf16.gmra.mxu2 %vm1421_vm6, %v3482_v22  ;;  %v824_v22 = vsel %vm790_vm5, %v3389_v21, 0.0 }
 0x16f   : > { %v1703_v34 = vpop.f32.mrf.mxu3  ;;  %v825_v32 = vadd.f32 %v824_v22, %v823_v7 }
 0x170   : > { %v3568_v1 = vadd.f32 %v1703_v34, %v1605_v4  ;;  %v2538_v4 = vunpack.i.l.bf16 %v2537_v29 }
 0x171   : > { %v1607_v58 = vpop.f32.mrf.mxu2  ;;  %v1512_v23 = vpop.f32.mrf.mxu1  ;;  %v827_v34 = vadd.f32 %v826_v18, %v825_v32 }
 0x172   : > { %4120 = vst [vmem:[#allocation9_spill] sm:$0xff] %v3568_v1  ;;  %v1608_v47 = vadd.f32 %v1607_v58, %v1507_v8  ;;  %v1409_v8 = vsel %vm648_vm4, %v3274_v20, %v2534_v0  ;;  %v828_v58 = vsel %vm790_vm5, %v3428_v9, 0.0  ;;  %v1410_v7 = vsel %vm790_vm5, %v1408_v33, %v2538_v4 }
 0x173   : > { %2007 = vst.msk [vmem:[%s3378_s17 + $0x48] sm:$0xff] %vm790_vm5, %v3568_v1  ;;  %v1411_v48 = vsel %vm790_vm5, %v1409_v8, %v2539_v13  ;;  %v829_v63 = vadd.f32 %v828_v58, %v827_v34  ;;  %v834_v4 = vsel %vm790_vm5, %v3489_v54, 0.0  ;;  %v836_v58 = vsel %vm790_vm5, %v3511_v17, 0.0 }
 0x174   : > { %v3573_v38 = vpop.f32.mrf.mxu0  ;;  %2269 = vmatmul.msk.bf16.gmra.mxu1 %vm1421_vm6, %v3566_v62  ;;  %2308 = vmatmul.msk.bf16.gmra.mxu3 %vm1421_vm6, %v3566_v62  ;;  %v1412_v0 = vpack.c.bf16 %v1411_v48, %v1410_v7 }
 0x175   : > { %1023 = vst.msk [vmem:[%s3046_s26 + $0xd0] sm:$0xff] %vm790_vm5, %v3573_v38 }
 0x177   : > { %v1706_v37 = vpop.f32.mrf.mxu3 }
 0x178   : > { %v3586_v12 = vadd.f32 %v1706_v37, %v1608_v47  ;;  %v830_v47 = vsel %vm790_vm5, %v3447_v25, 0.0 }
 0x179   : > { %v1609_v36 = vpop.f32.mrf.mxu2  ;;  %v1514_v6 = vpop.f32.mrf.mxu1  ;;  %v831_v37 = vadd.f32 %v830_v47, %v829_v63  ;;  %v840_v63 = vsel %vm790_vm5, %v3553_v10, 0.0 }
 0x17a   : > { %4121 = vst [vmem:[#allocation10_spill] sm:$0xff] %v3586_v12  ;;  %v1610_v20 = vadd.f32 %v1609_v36, %v1509_v35 }
 0x17b   : > { %2008 = vst.msk [vmem:[%s3378_s17 + $0x50] sm:$0xff] %vm790_vm5, %v3586_v12 }
 0x17c   : > { %v3595_v56 = vpop.f32.mrf.mxu0 }
 0x17d   : > { %1024 = vst.msk [vmem:[%s3046_s26 + $0xd8] sm:$0xff] %vm790_vm5, %v3595_v56 }
 0x17e   : > { %2289 = vmatmul.msk.bf16.gmra.mxu2 %vm1421_vm6, %v3524_v49  ;;  %v832_v49 = vsel %vm790_vm5, %v3469_v30, 0.0 }
 0x17f   : > { %v1708_v22 = vpop.f32.mrf.mxu3  ;;  %v833_v36 = vadd.f32 %v832_v49, %v831_v37 }
 0x180   : > { %v3608_v3 = vadd.f32 %v1708_v22, %v1610_v20 }
 0x181   : > { %v1612_v29 = vpop.f32.mrf.mxu2  ;;  %v1517_v32 = vpop.f32.mrf.mxu1  ;;  %v835_v7 = vadd.f32 %v834_v4, %v833_v36 }
 0x182   : > { %4122 = vst [vmem:[#allocation11_spill] sm:$0xff] %v3608_v3  ;;  %v1613_v35 = vadd.f32 %v1612_v29, %v1512_v23  ;;  %v838_v23 = vsel %vm790_vm5, %v3531_v16, 0.0  ;;  %v842_v29 = vsel %vm790_vm5, %v3573_v38, 0.0 }
 0x183   : > { %2009 = vst.msk [vmem:[%s3378_s17 + $0x58] sm:$0xff] %vm790_vm5, %v3608_v3  ;;  %v837_v20 = vadd.f32 %v836_v58, %v835_v7 }
 0x184   : > { %v3613_v18 = vpop.f32.mrf.mxu0  ;;  %2270 = vmatmul.msk.bf16.gmra.mxu1 %vm1421_vm6, %v1412_v0  ;;  %2309 = vmatmul.msk.bf16.gmra.mxu3 %vm1421_vm6, %v1412_v0 }
 0x185   : > { %1025 = vst.msk [vmem:[%s3046_s26 + $0xe0] sm:$0xff] %vm790_vm5, %v3613_v18  ;;  %v839_v47 = vadd.f32 %v838_v23, %v837_v20 }
 0x187   : > { %v1711_v13 = vpop.f32.mrf.mxu3 }
 0x188   : > { %v3624_v8 = vadd.f32 %v1711_v13, %v1613_v35  ;;  %v841_v35 = vadd.f32 %v840_v63, %v839_v47  ;;  %v844_v13 = vsel %vm790_vm5, %v3595_v56, 0.0 }
 0x189   : > { %v1614_v33 = vpop.f32.mrf.mxu2  ;;  %v1519_v34 = vpop.f32.mrf.mxu1 }
 0x18a   : > { %4123 = vst [vmem:[#allocation12_spill] sm:$0xff] %v3624_v8  ;;  %v1615_v22 = vadd.f32 %v1614_v33, %v1514_v6  ;;  %v846_v6 = vsel %vm790_vm5, %v3613_v18, 0.0 }
 0x18b   : > { %2010 = vst.msk [vmem:[%s3378_s17 + $0x60] sm:$0xff] %vm790_vm5, %v3624_v8 }
 0x18c   : > { %v3631_v48 = vpop.f32.mrf.mxu0 }
 0x18d   : > { %1026 = vst.msk [vmem:[%s3046_s26 + $0xe8] sm:$0xff] %vm790_vm5, %v3631_v48  ;;  %v848_v58 = vsel %vm790_vm5, %v3631_v48, 0.0 }
 0x18e   : > { %2290 = vmatmul.msk.bf16.gmra.mxu2 %vm1421_vm6, %v3566_v62  ;;  %v843_v62 = vadd.f32 %v842_v29, %v841_v35 }
 0x18f   : > { %v1713_v0 = vpop.f32.mrf.mxu3 }
 0x190   : > { %v3644_v37 = vadd.f32 %v1713_v0, %v1615_v22  ;;  %v845_v33 = vadd.f32 %v844_v13, %v843_v62 }
 0x191   : > { %v1617_v49 = vpop.f32.mrf.mxu2  ;;  %v1522_v36 = vpop.f32.mrf.mxu1 }
 0x192   : > { %4124 = vst [vmem:[#allocation13_spill] sm:$0xff] %v3644_v37  ;;  %v1618_v7 = vadd.f32 %v1617_v49, %v1517_v32  ;;  %v847_v23 = vadd.f32 %v846_v6, %v845_v33 }
 0x193   : > { %2011 = vst.msk [vmem:[%s3378_s17 + $0x68] sm:$0xff] %vm790_vm5, %v3644_v37 }
 0x194   : > { %v3651_v4 = vpop.f32.mrf.mxu0  ;;  %2310 = vmatmul.msk.bf16.gmra.mxu3 %vm1421_vm6, %v3023_v59  ;;  %v849_v0 = vadd.f32 %v848_v58, %v847_v23 }
 0x195   : > { %1027 = vst.msk [vmem:[%s3046_s26 + $0xf0] sm:$0xff] %vm790_vm5, %v3651_v4  ;;  %v850_v63 = vsel %vm790_vm5, %v3651_v4, 0.0 }
 0x196   : > { %v851_v59 = vadd.f32 %v850_v63, %v849_v0 }
 0x197   : > { %v1716_v20 = vpop.f32.mrf.mxu3 }
 0x198   : > { %v3664_v22 = vadd.f32 %v1716_v20, %v1618_v7 }
 0x199   : > { %v1619_v47 = vpop.f32.mrf.mxu2  ;;  %v1524_v29 = vpop.f32.mrf.mxu1 }
 0x19a   : > { %4125 = vst [vmem:[#allocation14_spill] sm:$0xff] %v3664_v22  ;;  %v1620_v13 = vadd.f32 %v1619_v47, %v1519_v34 }
 0x19b   : > { %2012 = vst.msk [vmem:[%s3378_s17 + $0x70] sm:$0xff] %vm790_vm5, %v3664_v22 }
 0x19c   : > { %v3669_v35 = vpop.f32.mrf.mxu0 }
 0x19d   : > { %v852_v32 = vsel %vm790_vm5, %v3669_v35, 0.0  ;;  %1028 = vst.msk [vmem:[%s3046_s26 + $0xf8] sm:$0xff] %vm790_vm5, %v3669_v35  ;;  %s2556_s26 = scalar_lea.hbm %s2555_s20, 2 }
 0x19e   : > { %v853_v49 = vadd.f32 %v852_v32, %v851_v59  ;;  %p2557_p11 = scmp.ne.s32.totalorder %s2555_s20, %s2556_s26 }
 0x19f   : > { %v1718_v6 = vpop.f32.mrf.mxu3 }
 0x1a0   : > { %v854_v62 = vrot.slane %v853_v49, 4  ;;  %v3676_v33 = vadd.f32 %v1718_v6, %v1620_v13  ;;  %p2558_p12 = pnand %p2557_p11, %p2712_p5 }
 0x1a1   : > { %v1622_v58 = vpop.f32.mrf.mxu2  ;;  %v1527_v23 = vpop.f32.mrf.mxu1 }
 0x1a2   : > { %4126 = vst [vmem:[#allocation15_spill] sm:$0xff] %v3676_v33  ;;  %v855_v7 = vadd.f32 %v854_v62, %v853_v49  ;;  %v1623_v0 = vadd.f32 %v1622_v58, %v1522_v36  ;;  %p2559_p13 = pneg %p2558_p12 }
 0x1a3   : > { %2013 = vst.msk [vmem:[%s3378_s17 + $0x78] sm:$0xff] %vm790_vm5, %v3676_v33 }
 0x1a4   : > { %v856_v20 = vrot.slane %v855_v7, 2 }
 0x1a6   : > { %v857_v63 = vadd.f32 %v856_v20, %v855_v7 }
 0x1a7   : > { %v1721_v22 = vpop.f32.mrf.mxu3 }
 0x1a8   : > { %v3681_v37 = vadd.f32 %v1721_v22, %v1623_v0  ;;  %v858_v59 = vrot.slane %v857_v63, 1 }
 0x1a9   : > { %v1624_v8 = vpop.f32.mrf.mxu2  ;;  %v1529_v34 = vpop.f32.mrf.mxu1 }
 0x1aa   : > { %4127 = vst [vmem:[#allocation16_spill] sm:$0xff] %v3681_v37  ;;  %v3686_v47 = vadd.f32 %v858_v59, %v857_v63 }
 0x1ab   : > { %2014 = vst.msk [vmem:[%s3378_s17 + $0x80] sm:$0xff] %vm790_vm5, %v3681_v37 }
 0x1ac   : > { %4128 = vst [vmem:[#allocation17_spill] sm:$0xff] %v3686_v47  ;;  %v3689_v13 = vmul.f32 0.00390625, %v3686_v47 }
 0x1ae   : > { %v861_v36 = vsub.f32 %v3056_v31, %v3689_v13  ;;  %v862_v22 = vsub.f32 %v3083_v55, %v3689_v13  ;;  %v863_v6 = vsub.f32 %v3110_v11, %v3689_v13  ;;  %v864_v20 = vsub.f32 %v3138_v52, %v3689_v13 }
 0x1af   : > { %v1723_v32 = vpop.f32.mrf.mxu3  ;;  %v865_v47 = vsub.f32 %v3154_v60, %v3689_v13  ;;  %v866_v31 = vsub.f32 %v3188_v28, %v3689_v13  ;;  %v867_v12 = vsub.f32 %v3208_v51, %v3689_v13  ;;  %v868_v60 = vsub.f32 %v3242_v26, %v3689_v13 }
 0x1b0   : > { %v893_v63 = vmul.f32 %v861_v36, %v861_v36  ;;  %v894_v0 = vmul.f32 %v862_v22, %v862_v22  ;;  %v895_v37 = vmul.f32 %v863_v6, %v863_v6  ;;  %v896_v33 = vmul.f32 %v864_v20, %v864_v20 }
 0x1b1   : > { %v1627_v49 = vpop.f32.mrf.mxu2  ;;  %v1532_v62 = vpop.f32.mrf.mxu1  ;;  %v897_v52 = vmul.f32 %v865_v47, %v865_v47  ;;  %v898_v6 = vmul.f32 %v866_v31, %v866_v31 }
 0x1b2   : > { %v925_v55 = vsel %vm790_vm5, %v893_v63, 0.0  ;;  %v926_v11 = vsel %vm790_vm5, %v894_v0, 0.0  ;;  %v928_v36 = vsel %vm790_vm5, %v895_v37, 0.0  ;;  %v930_v28 = vsel %vm790_vm5, %v896_v33, 0.0 }
 0x1b3   : > { %v927_v3 = vadd.f32 %v926_v11, %v925_v55  ;;  %v869_v63 = vsub.f32 %v3260_v2, %v3689_v13  ;;  %v899_v0 = vmul.f32 %v867_v12, %v867_v12  ;;  %v932_v55 = vsel %vm790_vm5, %v897_v52, 0.0 }
 0x1b4   : > { %v1625_v37 = vadd.f32 %v1624_v8, %v1524_v29  ;;  %v900_v11 = vmul.f32 %v868_v60, %v868_v60  ;;  %v934_v26 = vsel %vm790_vm5, %v898_v6, 0.0  ;;  %v871_v2 = vsub.f32 %v3300_v53, %v3689_v13 }
 0x1b5   : > { %v929_v1 = vadd.f32 %v928_v36, %v927_v3  ;;  %v870_v3 = vsub.f32 %v3286_v42, %v3689_v13  ;;  %v901_v12 = vmul.f32 %v869_v63, %v869_v63  ;;  %v936_v52 = vsel %vm790_vm5, %v899_v0, 0.0 }
 0x1b6   : > { %v3717_v36 = vadd.f32 %v1723_v32, %v1625_v37 }
 0x1b7   : > { %v1726_v58 = vpop.f32.mrf.mxu3  ;;  %v931_v20 = vadd.f32 %v930_v28, %v929_v1  ;;  %v1628_v1 = vadd.f32 %v1627_v49, %v1527_v23  ;;  %v902_v53 = vmul.f32 %v870_v3, %v870_v3  ;;  %v938_v49 = vsel %vm790_vm5, %v900_v11, 0.0 }
 0x1b8   : > { %2015 = vst.msk [vmem:[%s3378_s17 + $0x88] sm:$0xff] %vm790_vm5, %v3717_v36 }
 0x1b9   : > { %v1629_v7 = vpop.f32.mrf.mxu2  ;;  %v1534_v59 = vpop.f32.mrf.mxu1  ;;  %v933_v47 = vadd.f32 %v932_v55, %v931_v20  ;;  %v3725_v42 = vadd.f32 %v1726_v58, %v1628_v1  ;;  %v903_v58 = vmul.f32 %v871_v2, %v871_v2  ;;  %v942_v20 = vsel %vm790_vm5, %v902_v53, 0.0 }
 0x1ba   : > { %v1630_v33 = vadd.f32 %v1629_v7, %v1529_v34  ;;  %v872_v34 = vsub.f32 %v3312_v15, %v3689_v13  ;;  %v874_v15 = vsub.f32 %v3339_v44, %v3689_v13  ;;  %v875_v55 = vsub.f32 %v3347_v50, %v3689_v13 }
 0x1bb   : > { %v935_v31 = vadd.f32 %v934_v26, %v933_v47  ;;  %2016 = vst.msk [vmem:[%s3378_s17 + $0x90] sm:$0xff] %vm790_vm5, %v3725_v42  ;;  %v944_v37 = vsel %vm790_vm5, %v903_v58, 0.0  ;;  %v876_v44 = vsub.f32 %v3359_v19, %v3689_v13  ;;  %v877_v50 = vsub.f32 %v3367_v43, %v3689_v13 }
 0x1bc   : > { %v904_v6 = vmul.f32 %v872_v34, %v872_v34  ;;  %v906_v1 = vmul.f32 %v874_v15, %v874_v15  ;;  %v879_v34 = vsub.f32 %v3404_v14, %v3689_v13  ;;  %v881_v14 = vsub.f32 %v3447_v25, %v3689_v13 }
 0x1bd   : > { %v937_v29 = vadd.f32 %v936_v52, %v935_v31  ;;  %v909_v53 = vmul.f32 %v877_v50, %v877_v50 }
 0x1be   : > { %v950_v19 = vsel %vm790_vm5, %v906_v1, 0.0 }
 0x1bf   : > { %v1728_v22 = vpop.f32.mrf.mxu3 }
 0x1c0   : > { %v3727_v32 = vadd.f32 %v1728_v22, %v1630_v33  ;;  %v940_v22 = vsel %vm790_vm5, %v901_v12, 0.0  ;;  %v946_v33 = vsel %vm790_vm5, %v904_v6, 0.0 }
 0x1c1   : > { %v1632_v41 = vpop.f32.mrf.mxu2  ;;  %v1537_v51 = vpop.f32.mrf.mxu1 }
 0x1c2   : > { %v1633_v28 = vadd.f32 %v1632_v41, %v1532_v62  ;;  %v939_v41 = vadd.f32 %v938_v49, %v937_v29  ;;  %v873_v62 = vsub.f32 %v3326_v46, %v3689_v13  ;;  %2017 = vst.msk [vmem:[%s3378_s17 + $0x98] sm:$0xff] %vm790_vm5, %v3727_v32 }
 0x1c4   : > { %v941_v60 = vadd.f32 %v940_v22, %v939_v41  ;;  %v905_v47 = vmul.f32 %v873_v62, %v873_v62 }
 0x1c6   : > { %v943_v0 = vadd.f32 %v942_v20, %v941_v60  ;;  %v948_v12 = vsel %vm790_vm5, %v905_v47, 0.0  ;;  %v956_v20 = vsel %vm790_vm5, %v909_v53, 0.0 }
 0x1c7   : > { %v1731_v8 = vpop.f32.mrf.mxu3 }
 0x1c8   : > { %v3732_v7 = vadd.f32 %v1731_v8, %v1633_v28  ;;  %v945_v11 = vadd.f32 %v944_v37, %v943_v0  ;;  %v878_v28 = vsub.f32 %v3389_v21, %v3689_v13  ;;  %v908_v8 = vmul.f32 %v876_v44, %v876_v44 }
 0x1c9   : > { %v1634_v23 = vpop.f32.mrf.mxu2  ;;  %v1539_v63 = vpop.f32.mrf.mxu1  ;;  %v880_v21 = vsub.f32 %v3428_v9, %v3689_v13 }
 0x1ca   : > { %2018 = vst.msk [vmem:[%s3378_s17 + $0xa0] sm:$0xff] %vm790_vm5, %v3732_v7  ;;  %v1635_v46 = vadd.f32 %v1634_v23, %v1534_v59  ;;  %v947_v2 = vadd.f32 %v946_v33, %v945_v11  ;;  %v907_v59 = vmul.f32 %v875_v55, %v875_v55  ;;  %v910_v60 = vmul.f32 %v878_v28, %v878_v28 }
 0x1cb   : > { %v954_v15 = vsel %vm790_vm5, %v908_v8, 0.0  ;;  %v912_v55 = vmul.f32 %v880_v21, %v880_v21  ;;  %v913_v11 = vmul.f32 %v881_v14, %v881_v14  ;;  %v1794_v28 = vsel %vm790_vm5, %v3397_v24, 0.0 }
 0x1cc   : > { %v949_v52 = vadd.f32 %v948_v12, %v947_v2  ;;  %v952_v49 = vsel %vm790_vm5, %v907_v59, 0.0  ;;  %v958_v9 = vsel %vm790_vm5, %v910_v60, 0.0  ;;  %v1798_v21 = vsel %vm790_vm5, %v3440_v27, 0.0 }
 0x1cd   : > { %v962_v50 = vsel %vm790_vm5, %v912_v55, 0.0  ;;  %v889_v55 = vsub.f32 %v3613_v18, %v3689_v13 }
 0x1ce   : > { %v951_v29 = vadd.f32 %v950_v19, %v949_v52  ;;  %v964_v52 = vsel %vm790_vm5, %v913_v11, 0.0 }
 0x1cf   : > { %v1733_v3 = vpop.f32.mrf.mxu3 }
 0x1d0   : > { %v3752_v26 = vadd.f32 %v1733_v3, %v1635_v46  ;;  %v953_v62 = vadd.f32 %v952_v49, %v951_v29  ;;  %v882_v46 = vsub.f32 %v3469_v30, %v3689_v13  ;;  %v883_v3 = vsub.f32 %v3489_v54, %v3689_v13 }
 0x1d1   : > { %v1637_v31 = vpop.f32.mrf.mxu2  ;;  %v1542_v43 = vpop.f32.mrf.mxu1  ;;  %v884_v30 = vsub.f32 %v3511_v17, %v3689_v13  ;;  %v885_v54 = vsub.f32 %v3531_v16, %v3689_v13  ;;  %v886_v17 = vsub.f32 %v3553_v10, %v3689_v13 }
 0x1d2   : > { %2019 = vst.msk [vmem:[%s3378_s17 + $0xa8] sm:$0xff] %vm790_vm5, %v3752_v26  ;;  %v1638_v23 = vadd.f32 %v1637_v31, %v1537_v51  ;;  %v955_v6 = vadd.f32 %v954_v15, %v953_v62  ;;  %v911_v51 = vmul.f32 %v879_v34, %v879_v34  ;;  %v914_v2 = vmul.f32 %v882_v46, %v882_v46 }
 0x1d3   : > { %v916_v19 = vmul.f32 %v884_v30, %v884_v30  ;;  %v1796_v34 = vsel %vm790_vm5, %v3419_v5, 0.0  ;;  %v917_v62 = vmul.f32 %v885_v54, %v885_v54 }
 0x1d4   : > { %v957_v0 = vadd.f32 %v956_v20, %v955_v6  ;;  %v960_v31 = vsel %vm790_vm5, %v911_v51, 0.0  ;;  %v966_v29 = vsel %vm790_vm5, %v914_v2, 0.0  ;;  %v918_v51 = vmul.f32 %v886_v17, %v886_v17 }
 0x1d5   : > { %v970_v20 = vsel %vm790_vm5, %v916_v19, 0.0 }
 0x1d6   : > { %v959_v47 = vadd.f32 %v958_v9, %v957_v0 }
 0x1d7   : > { %v1736_v41 = vpop.f32.mrf.mxu3 }
 0x1d8   : > { %v3769_v58 = vadd.f32 %v1736_v41, %v1638_v23  ;;  %v961_v44 = vadd.f32 %v960_v31, %v959_v47  ;;  %v1793_v23 = vsel %vm790_vm5, %v3380_v39, 0.0  ;;  %v887_v41 = vsub.f32 %v3573_v38, %v3689_v13 }
 0x1d9   : > { %v1639_v22 = vpop.f32.mrf.mxu2  ;;  %v1544_v59 = vpop.f32.mrf.mxu1  ;;  %v1795_v49 = vadd.f32 %v1794_v28, %v1793_v23  ;;  %v1800_v38 = vsel %vm790_vm5, %v3460_v57, 0.0  ;;  %v972_v47 = vsel %vm790_vm5, %v917_v62, 0.0  ;;  %v890_v31 = vsub.f32 %v3631_v48, %v3689_v13  ;;  %v4129_v23 = vld [vmem:[#allocation8_spill] sm:$0xff] }
 0x1da   : > { %2020 = vst.msk [vmem:[%s3378_s17 + $0xb0] sm:$0xff] %vm790_vm5, %v3769_v58  ;;  %v1640_v37 = vadd.f32 %v1639_v22, %v1539_v63  ;;  %v963_v12 = vadd.f32 %v962_v50, %v961_v44  ;;  %v915_v63 = vmul.f32 %v883_v3, %v883_v3  ;;  %v919_v9 = vmul.f32 %v887_v41, %v887_v41  ;;  %v4130_v41 = vld [vmem:[#allocation9_spill] sm:$0xff] }
 0x1db   : > { %v1797_v14 = vadd.f32 %v1796_v34, %v1795_v49  ;;  %v974_v44 = vsel %vm790_vm5, %v918_v51, 0.0  ;;  %v891_v50 = vsub.f32 %v3651_v4, %v3689_v13  ;;  %v1806_v48 = vsel %vm790_vm5, %v3526_v40, 0.0 }
 0x1dc   : > { %v965_v8 = vadd.f32 %v964_v52, %v963_v12  ;;  %v968_v22 = vsel %vm790_vm5, %v915_v63, 0.0  ;;  %v921_v12 = vmul.f32 %v889_v55, %v889_v55  ;;  %v976_v54 = vsel %vm790_vm5, %v919_v9, 0.0 }
 0x1dd   : > { %v1799_v46 = vadd.f32 %v1798_v21, %v1797_v14  ;;  %v922_v19 = vmul.f32 %v890_v31, %v890_v31  ;;  %v1808_v4 = vsel %vm790_vm5, %v4129_v23, 0.0  ;;  %v1810_v62 = vsel %vm790_vm5, %v4130_v41, 0.0 }
 0x1de   : > { %v967_v16 = vadd.f32 %v966_v29, %v965_v8  ;;  %v980_v49 = vsel %vm790_vm5, %v921_v12, 0.0 }
 0x1df   : > { %v1738_v25 = vpop.f32.mrf.mxu3  ;;  %v1801_v11 = vadd.f32 %v1800_v38, %v1799_v46 }
 0x1e0   : > { %v3786_v1 = vadd.f32 %v1738_v25, %v1640_v37  ;;  %v969_v60 = vadd.f32 %v968_v22, %v967_v16 }
 0x1e1   : > { %v1642_v33 = vpop.f32.mrf.mxu2  ;;  %v1547_v37 = vpop.f32.mrf.mxu1 }
 0x1e2   : > { %2021 = vst.msk [vmem:[%s3378_s17 + $0xb8] sm:$0xff] %vm790_vm5, %v3786_v1  ;;  %v1643_v53 = vadd.f32 %v1642_v33, %v1542_v43  ;;  %v888_v43 = vsub.f32 %v3595_v56, %v3689_v13  ;;  %v971_v0 = vadd.f32 %v970_v20, %v969_v60  ;;  %v1802_v56 = vsel %vm790_vm5, %v3484_v61, 0.0  ;;  %v4131_v60 = vld [vmem:[#allocation10_spill] sm:$0xff] }
 0x1e3   : > { %v1804_v33 = vsel %vm790_vm5, %v3502_v45, 0.0  ;;  %v1803_v2 = vadd.f32 %v1802_v56, %v1801_v11  ;;  %v4133_v11 = vld [vmem:[#allocation12_spill] sm:$0xff] }
 0x1e4   : > { %v973_v3 = vadd.f32 %v972_v47, %v971_v0  ;;  %v920_v25 = vmul.f32 %v888_v43, %v888_v43  ;;  %v4132_v0 = vld [vmem:[#allocation11_spill] sm:$0xff]  ;;  %v1816_v31 = vsel %vm790_vm5, %v4133_v11, 0.0 }
 0x1e5   : > { %v1805_v17 = vadd.f32 %v1804_v33, %v1803_v2  ;;  %v1814_v46 = vsel %vm790_vm5, %v4132_v0, 0.0  ;;  %v4135_v2 = vld [vmem:[#allocation14_spill] sm:$0xff] }
 0x1e6   : > { %v975_v30 = vadd.f32 %v974_v44, %v973_v3  ;;  %v978_v29 = vsel %vm790_vm5, %v920_v25, 0.0  ;;  %v4134_v44 = vld [vmem:[#allocation13_spill] sm:$0xff] }
 0x1e7   : > { %v1741_v10 = vpop.f32.mrf.mxu3  ;;  %v1807_v16 = vadd.f32 %v1806_v48, %v1805_v17  ;;  %v1818_v33 = vsel %vm790_vm5, %v4134_v44, 0.0  ;;  %v4136_v17 = vld [vmem:[#allocation15_spill] sm:$0xff] }
 0x1e8   : > { %v3811_v15 = vadd.f32 %v1741_v10, %v1643_v53  ;;  %v977_v52 = vadd.f32 %v976_v54, %v975_v30  ;;  %v923_v53 = vmul.f32 %v891_v50, %v891_v50  ;;  %v1820_v50 = vsel %vm790_vm5, %v4135_v2, 0.0 }
 0x1e9   : > { %v1644_v6 = vpop.f32.mrf.mxu2  ;;  %v1809_v10 = vadd.f32 %v1808_v4, %v1807_v16  ;;  %v1549_v21 = vpop.f32.mrf.mxu1  ;;  %v4137_v16 = vld [vmem:[#allocation16_spill] sm:$0xff] }
 0x1ea   : > { %2022 = vst.msk [vmem:[%s3378_s17 + $0xc0] sm:$0xff] %vm790_vm5, %v3811_v15  ;;  %v1645_v18 = vadd.f32 %v1644_v6, %v1544_v59  ;;  %v892_v59 = vsub.f32 %v3669_v35, %v3689_v13  ;;  %v979_v34 = vadd.f32 %v978_v29, %v977_v52  ;;  %v982_v13 = vsel %vm790_vm5, %v922_v19, 0.0 }
 0x1eb   : > { %v1812_v6 = vsel %vm790_vm5, %v4131_v60, 0.0  ;;  %v1811_v51 = vadd.f32 %v1810_v62, %v1809_v10  ;;  %v984_v20 = vsel %vm790_vm5, %v923_v53, 0.0  ;;  %v1824_v53 = vsel %vm790_vm5, %v4137_v16, 0.0 }
 0x1ec   : > { %v981_v22 = vadd.f32 %v980_v49, %v979_v34  ;;  %v924_v35 = vmul.f32 %v892_v59, %v892_v59  ;;  %v1822_v59 = vsel %vm790_vm5, %v4136_v17, 0.0 }
 0x1ed   : > { %v1813_v56 = vadd.f32 %v1812_v6, %v1811_v51 }
 0x1ee   : > { %v983_v14 = vadd.f32 %v982_v13, %v981_v22  ;;  %v986_v3 = vsel %vm790_vm5, %v924_v35, 0.0  ;;  %v1826_v22 = vsel %vm790_vm5, %v3717_v36, 0.0  ;;  %v1828_v35 = vsel %vm790_vm5, %v3725_v42, 0.0 }
 0x1ef   : > { %v1743_v63 = vpop.f32.mrf.mxu3 }
 0x1f0   : > { %v3836_v28 = vadd.f32 %v1743_v63, %v1645_v18  ;;  %v985_v55 = vadd.f32 %v984_v20, %v983_v14 }
 0x1f1   : > { %v1647_v8 = vpop.f32.mrf.mxu2  ;;  %v1552_v48 = vpop.f32.mrf.mxu1 }
 0x1f2   : > { %2023 = vst.msk [vmem:[%s3378_s17 + $0xc8] sm:$0xff] %vm790_vm5, %v3836_v28  ;;  %v1648_v43 = vadd.f32 %v1647_v8, %v1547_v37  ;;  %v987_v25 = vadd.f32 %v986_v3, %v985_v55  ;;  %v1815_v37 = vadd.f32 %v1814_v46, %v1813_v56  ;;  %v1832_v56 = vsel %vm790_vm5, %v3732_v7, 0.0 }
 0x1f4   : > { %v988_v30 = vrot.slane %v987_v25, 4  ;;  %v1817_v18 = vadd.f32 %v1816_v31, %v1815_v37  ;;  %v1834_v31 = vsel %vm790_vm5, %v3752_v26, 0.0  ;;  %v1836_v37 = vsel %vm790_vm5, %v3769_v58, 0.0 }
 0x1f6   : > { %v989_v12 = vadd.f32 %v988_v30, %v987_v25  ;;  %v1819_v63 = vadd.f32 %v1818_v33, %v1817_v18 }
 0x1f7   : > { %v1746_v38 = vpop.f32.mrf.mxu3 }
 0x1f8   : > { %v3855_v9 = vadd.f32 %v1746_v38, %v1648_v43  ;;  %v990_v8 = vrot.slane %v989_v12, 2  ;;  %v1821_v4 = vadd.f32 %v1820_v50, %v1819_v63  ;;  %v1830_v43 = vsel %vm790_vm5, %v3727_v32, 0.0  ;;  %v4138_v38 = vld [vmem:[#allocation17_spill] sm:$0xff] }
 0x1f9   : > { %v1649_v47 = vpop.f32.mrf.mxu2  ;;  %v1838_v50 = vsel %vm790_vm5, %v3786_v1, 0.0 }
 0x1fa   : > { %2024 = vst.msk [vmem:[%s3378_s17 + $0xd0] sm:$0xff] %vm790_vm5, %v3855_v9  ;;  %v1650_v54 = vadd.f32 %v1649_v47, %v1549_v21  ;;  %v991_v34 = vadd.f32 %v990_v8, %v989_v12  ;;  %v1823_v49 = vadd.f32 %v1822_v59, %v1821_v4  ;;  %v1554_v47 = vpop.f32.mrf.mxu1  ;;  %v1842_v59 = vsel %vm790_vm5, %v3836_v28, 0.0 }
 0x1fb   : > { %v1844_v4 = vsel %vm790_vm5, %v3855_v9, 0.0 }
 0x1fc   : > { %v992_v62 = vrot.slane %v991_v34, 1  ;;  %v1825_v10 = vadd.f32 %v1824_v53, %v1823_v49 }
 0x1fe   : > { %v993_v21 = vadd.f32 %v992_v62, %v991_v34  ;;  %v1827_v6 = vadd.f32 %v1826_v22, %v1825_v10 }
 0x1ff   : > { %v1748_v52 = vpop.f32.mrf.mxu3 }
 0x200   : > { %v3869_v19 = vadd.f32 %v1748_v52, %v1650_v54  ;;  %v994_v46 = vsel %vm351_vm0, %v4138_v38, %v993_v21  ;;  %v1829_v55 = vadd.f32 %v1828_v35, %v1827_v6 }
 0x201   : > { %v1652_v29 = vpop.f32.mrf.mxu2  ;;  %996 = vst.msk [vmem:[%s269_s29] sm:$0x3] %vm995_vm7, %v994_v46  ;;  %s2560_s29 = scalar_lea.hbm %s4097_s6, 4 }
 0x202   : > { %2025 = vst.msk [vmem:[%s3378_s17 + $0xd8] sm:$0xff] %vm790_vm5, %v3869_v19  ;;  %v1653_v13 = vadd.f32 %v1652_v29, %v1552_v48  ;;  %v1831_v3 = vadd.f32 %v1830_v43, %v1829_v55  ;;  %v1840_v48 = vsel %vm790_vm5, %v3811_v15, 0.0  ;;  %v1557_v8 = vpop.f32.mrf.mxu1  ;;  %p2562_p1 = scmp.lt.s32.totalorder %s2560_s29, %s2556_s26 }
 0x204   : > { %v1833_v25 = vadd.f32 %v1832_v56, %v1831_v3  ;;  %p2563_p2 = por %p2562_p1, %p2561_p0 }
 0x206   : > { %v1835_v30 = vadd.f32 %v1834_v31, %v1833_v25  ;;  %p2564_p3 = pnand %p2563_p2, %p2559_p13 }
 0x207   : > { %v1751_v14 = vpop.f32.mrf.mxu3 }
 0x208   : > { %v3886_v51 = vadd.f32 %v1751_v14, %v1653_v13  ;;  %v1837_v54 = vadd.f32 %v1836_v37, %v1835_v30 }
 0x209   : > { %v1654_v20 = vpop.f32.mrf.mxu2 }
 0x20a   : > { %2026 = vst.msk [vmem:[%s3378_s17 + $0xe0] sm:$0xff] %vm790_vm5, %v3886_v51  ;;  %v1655_v33 = vadd.f32 %v1654_v20, %v1554_v47  ;;  %v1839_v52 = vadd.f32 %v1838_v50, %v1837_v54 }
 0x20c   : > { %v1841_v29 = vadd.f32 %v1840_v48, %v1839_v52 }
 0x20f   : > { %v1753_v18 = vpop.f32.mrf.mxu3 }
 0x210   : > { %v3904_v12 = vadd.f32 %v1753_v18, %v1655_v33 }
 0x211   : > { %v1657_v63 = vpop.f32.mrf.mxu2 }
 0x212   : > { %2027 = vst.msk [vmem:[%s3378_s17 + $0xe8] sm:$0xff] %vm790_vm5, %v3904_v12  ;;  %v1658_v34 = vadd.f32 %v1657_v63, %v1557_v8 }
 0x213   : > { %2567 = shalt.err (!%p2564_p3)
}
 0x214   : > { %2324 = dma.vmem_to_hbm [thread:$0]  (%p2712_p5), %s2079_s14, 32, %s2081_s18, %s2046_s19   ;;  %v1843_v53 = vadd.f32 %v1842_v59, %v1841_v29  ;;  %v1846_v62 = vsel %vm790_vm5, %v3869_v19, 0.0  ;;  %v1848_v35 = vsel %vm790_vm5, %v3886_v51, 0.0  ;;  %v1850_v6 = vsel %vm790_vm5, %v3904_v12, 0.0  ;;  %v1559_v43 = vpop.f32.mrf.mxu1 }
 0x215   : > { %s2059_s14 = scalar_lea.hbm %s4095_s4, %s2313_s9  ;;  %s255_s18 = scalar_lea.vmem [#allocation2], %s2227_s28 }
 0x216   : > { %v1845_v10 = vadd.f32 %v1844_v4, %v1843_v53  ;;  %s2061_s19 = sshll.u32 %s255_s18, 4  ;;  %s2063_s20 = sshll.u32 %s2059_s14, 4  ;;  %s2062_s19 = int_to_ptr.vmem [resolvable:$true] %s2061_s19  ;;  %s2064_s20 = int_to_ptr.hbm [resolvable:$true] %s2063_s20 }
 0x217   : > { %v1756_v49 = vpop.f32.mrf.mxu3  ;;  %s2036_s25 = scalar_lea.sflag [#allocation3], %s3872_s12  ;;  %s2582_s26 = sshra.s32 %s2064_s20, 4  ;;  %s2583_s26 = int_to_ptr.hbm [resolvable:$true] %s2582_s26 }
 0x218   : > { %v3934_v22 = vadd.f32 %v1756_v49, %v1658_v34  ;;  %v1847_v13 = vadd.f32 %v1846_v62, %v1845_v10  ;;  %s2584_s15 = scalar_lea.hbm %s2583_s26, 2  ;;  %s2588_s16 = scalar_lea.hbm %s4095_s4, 4 }
 0x219   : > { %v1659_v21 = vpop.f32.mrf.mxu2  ;;  %p2585_p4 = scmp.ne.s32.totalorder %s2583_s26, %s2584_s15  ;;  %p2589_p9 = scmp.lt.s32.totalorder %s2583_s26, %s4095_s4 }
 0x21a   : > { %2028 = vst.msk [vmem:[%s3378_s17 + $0xf0] sm:$0xff] %vm790_vm5, %v3934_v22  ;;  %v1849_v14 = vadd.f32 %v1848_v35, %v1847_v13  ;;  %v1852_v20 = vsel %vm790_vm5, %v3934_v22, 0.0  ;;  %v1660_v38 = vadd.f32 %v1659_v21, %v1559_v43  ;;  %p2590_p10 = scmp.lt.s32.totalorder %s2588_s16, %s2584_s15 }
 0x21b   : > { %p2586_p7 = pnand %p2585_p4, %p2712_p5 }
 0x21c   : > { %v1851_v46 = vadd.f32 %v1850_v6, %v1849_v14  ;;  %p2591_p11 = por %p2590_p10, %p2589_p9 }
 0x21d   : > { %p2587_p8 = pneg %p2586_p7 }
 0x21e   : > { %v1853_v56 = vadd.f32 %v1852_v20, %v1851_v46 }
 0x21f   : > { %v1758_v55 = vpop.f32.mrf.mxu3  ;;  %p2592_p12 = pnand %p2591_p11, %p2587_p8 }
 0x220   : > { %v3945_v47 = vadd.f32 %v1758_v55, %v1660_v38 }
 0x222   : > { %v1854_v3 = vsel %vm790_vm5, %v3945_v47, 0.0  ;;  %2029 = vst.msk [vmem:[%s3378_s17 + $0xf8] sm:$0xff] %vm790_vm5, %v3945_v47 }
 0x223   : > { %v1855_v31 = vadd.f32 %v1854_v3, %v1853_v56 }
 0x225   : > { %v1856_v25 = vrot.slane %v1855_v31, 4 }
 0x227   : > { %v1857_v37 = vadd.f32 %v1856_v25, %v1855_v31 }
 0x229   : > { %v1858_v33 = vrot.slane %v1857_v37, 2 }
 0x22b   : > { %v1859_v30 = vadd.f32 %v1858_v33, %v1857_v37 }
 0x22d   : > { %v1860_v18 = vrot.slane %v1859_v30, 1 }
 0x22f   : > { %v3952_v50 = vadd.f32 %v1860_v18, %v1859_v30 }
 0x231   : > { %v3955_v54 = vmul.f32 0.00390625, %v3952_v50 }
 0x233   : > { %v1863_v63 = vsub.f32 %v3380_v39, %v3955_v54  ;;  %v1864_v48 = vsub.f32 %v3397_v24, %v3955_v54  ;;  %v1865_v52 = vsub.f32 %v3419_v5, %v3955_v54  ;;  %v1866_v8 = vsub.f32 %v3440_v27, %v3955_v54 }
 0x234   : > { %v1867_v4 = vsub.f32 %v3460_v57, %v3955_v54  ;;  %v1868_v53 = vsub.f32 %v3484_v61, %v3955_v54  ;;  %v1869_v5 = vsub.f32 %v3502_v45, %v3955_v54  ;;  %v1870_v57 = vsub.f32 %v3526_v40, %v3955_v54 }
 0x235   : > { %v1895_v59 = vmul.f32 %v1863_v63, %v1863_v63  ;;  %v1896_v29 = vmul.f32 %v1864_v48, %v1864_v48  ;;  %v1897_v34 = vmul.f32 %v1865_v52, %v1865_v52  ;;  %v1898_v49 = vmul.f32 %v1866_v8, %v1866_v8 }
 0x236   : > { %v1899_v10 = vmul.f32 %v1867_v4, %v1867_v4  ;;  %v1900_v13 = vmul.f32 %v1868_v53, %v1868_v53  ;;  %v1871_v6 = vsub.f32 %v4129_v23, %v3955_v54  ;;  %v1901_v14 = vmul.f32 %v1869_v5, %v1869_v5 }
 0x237   : > { %v1927_v39 = vsel %vm790_vm5, %v1895_v59, 0.0  ;;  %v1928_v24 = vsel %vm790_vm5, %v1896_v29, 0.0  ;;  %v1930_v27 = vsel %vm790_vm5, %v1897_v34, 0.0  ;;  %v1932_v21 = vsel %vm790_vm5, %v1898_v49, 0.0 }
 0x238   : > { %v1929_v62 = vadd.f32 %v1928_v24, %v1927_v39  ;;  %v1934_v43 = vsel %vm790_vm5, %v1899_v10, 0.0  ;;  %v1872_v45 = vsub.f32 %v4130_v41, %v3955_v54  ;;  %v1902_v38 = vmul.f32 %v1870_v57, %v1870_v57 }
 0x239   : > { %v1936_v46 = vsel %vm790_vm5, %v1900_v13, 0.0  ;;  %v1873_v40 = vsub.f32 %v4131_v60, %v3955_v54  ;;  %v1903_v56 = vmul.f32 %v1871_v6, %v1871_v6  ;;  %v1938_v3 = vsel %vm790_vm5, %v1901_v14, 0.0 }
 0x23a   : > { %v1931_v35 = vadd.f32 %v1930_v27, %v1929_v62  ;;  %v1874_v23 = vsub.f32 %v4132_v0, %v3955_v54  ;;  %v1904_v25 = vmul.f32 %v1872_v45, %v1872_v45  ;;  %v1940_v37 = vsel %vm790_vm5, %v1902_v38, 0.0 }
 0x23b   : > { %v1875_v41 = vsub.f32 %v4133_v11, %v3955_v54  ;;  %v1905_v30 = vmul.f32 %v1873_v40, %v1873_v40  ;;  %v1942_v18 = vsel %vm790_vm5, %v1903_v56, 0.0  ;;  %v1876_v60 = vsub.f32 %v4134_v44, %v3955_v54 }
 0x23c   : > { %v1933_v61 = vadd.f32 %v1932_v21, %v1931_v35  ;;  %v1906_v48 = vmul.f32 %v1874_v23, %v1874_v23  ;;  %v1944_v52 = vsel %vm790_vm5, %v1904_v25, 0.0  ;;  %v1877_v0 = vsub.f32 %v4135_v2, %v3955_v54 }
 0x23d   : > { %v1907_v59 = vmul.f32 %v1875_v41, %v1875_v41  ;;  %v1946_v29 = vsel %vm790_vm5, %v1905_v30, 0.0  ;;  %v1878_v11 = vsub.f32 %v4136_v17, %v3955_v54  ;;  %v1908_v34 = vmul.f32 %v1876_v60, %v1876_v60 }
 0x23e   : > { %v1935_v20 = vadd.f32 %v1934_v43, %v1933_v61  ;;  %v1948_v53 = vsel %vm790_vm5, %v1906_v48, 0.0  ;;  %v1879_v44 = vsub.f32 %v4137_v16, %v3955_v54  ;;  %v1909_v39 = vmul.f32 %v1877_v0, %v1877_v0 }
 0x23f   : > { %v1950_v24 = vsel %vm790_vm5, %v1907_v59, 0.0  ;;  %v1880_v2 = vsub.f32 %v3717_v36, %v3955_v54  ;;  %v1910_v5 = vmul.f32 %v1878_v11, %v1878_v11  ;;  %v1952_v10 = vsel %vm790_vm5, %v1908_v34, 0.0 }
 0x240   : > { %v1937_v55 = vadd.f32 %v1936_v46, %v1935_v20  ;;  %v1881_v17 = vsub.f32 %v3725_v42, %v3955_v54  ;;  %v1911_v35 = vmul.f32 %v1879_v44, %v1879_v44  ;;  %v1954_v57 = vsel %vm790_vm5, %v1909_v39, 0.0 }
 0x241   : > { %v1882_v16 = vsub.f32 %v3727_v32, %v3955_v54  ;;  %v1912_v21 = vmul.f32 %v1880_v2, %v1880_v2  ;;  %v1956_v61 = vsel %vm790_vm5, %v1910_v5, 0.0  ;;  %v1883_v36 = vsub.f32 %v3732_v7, %v3955_v54 }
 0x242   : > { %v1939_v31 = vadd.f32 %v1938_v3, %v1937_v55  ;;  %v1913_v14 = vmul.f32 %v1881_v17, %v1881_v17  ;;  %v1958_v43 = vsel %vm790_vm5, %v1911_v35, 0.0  ;;  %v1884_v42 = vsub.f32 %v3752_v26, %v3955_v54 }
 0x243   : > { %v1914_v45 = vmul.f32 %v1882_v16, %v1882_v16  ;;  %v1960_v38 = vsel %vm790_vm5, %v1912_v21, 0.0  ;;  %v1885_v32 = vsub.f32 %v3769_v58, %v3955_v54  ;;  %v1915_v55 = vmul.f32 %v1883_v36, %v1883_v36 }
 0x244   : > { %v1941_v33 = vadd.f32 %v1940_v37, %v1939_v31  ;;  %v1962_v40 = vsel %vm790_vm5, %v1913_v14, 0.0  ;;  %v1886_v7 = vsub.f32 %v3786_v1, %v3955_v54  ;;  %v1916_v3 = vmul.f32 %v1884_v42, %v1884_v42 }
 0x245   : > { %v1964_v31 = vsel %vm790_vm5, %v1914_v45, 0.0  ;;  %v1887_v26 = vsub.f32 %v3811_v15, %v3955_v54  ;;  %v1917_v25 = vmul.f32 %v1885_v32, %v1885_v32  ;;  %v1966_v37 = vsel %vm790_vm5, %v1915_v55, 0.0 }
 0x246   : > { %v1943_v63 = vadd.f32 %v1942_v18, %v1941_v33  ;;  %v1888_v58 = vsub.f32 %v3836_v28, %v3955_v54  ;;  %v1918_v41 = vmul.f32 %v1886_v7, %v1886_v7  ;;  %v1968_v30 = vsel %vm790_vm5, %v1916_v3, 0.0 }
 0x247   : > { %v1889_v1 = vsub.f32 %v3855_v9, %v3955_v54  ;;  %v1970_v60 = vsel %vm790_vm5, %v1917_v25, 0.0  ;;  %v1890_v15 = vsub.f32 %v3869_v19, %v3955_v54  ;;  %v1891_v28 = vsub.f32 %v3886_v51, %v3955_v54 }
 0x248   : > { %v1945_v8 = vadd.f32 %v1944_v52, %v1943_v63  ;;  %v1919_v63 = vmul.f32 %v1887_v26, %v1887_v26  ;;  %v1920_v52 = vmul.f32 %v1888_v58, %v1888_v58  ;;  %v1892_v9 = vsub.f32 %v3904_v12, %v3955_v54 }
 0x249   : > { %v1921_v59 = vmul.f32 %v1889_v1, %v1889_v1  ;;  %v1922_v11 = vmul.f32 %v1890_v15, %v1890_v15  ;;  %v1893_v19 = vsub.f32 %v3934_v22, %v3955_v54  ;;  %v1894_v51 = vsub.f32 %v3945_v47, %v3955_v54 }
 0x24a   : > { %v1947_v4 = vadd.f32 %v1946_v29, %v1945_v8  ;;  %v1972_v8 = vsel %vm790_vm5, %v1918_v41, 0.0  ;;  %v1974_v29 = vsel %vm790_vm5, %v1919_v63, 0.0  ;;  %v1976_v34 = vsel %vm790_vm5, %v1920_v52, 0.0 }
 0x24b   : > { %v1978_v44 = vsel %vm790_vm5, %v1921_v59, 0.0  ;;  %v1925_v12 = vmul.f32 %v1893_v19, %v1893_v19 }
 0x24c   : > { %v1949_v49 = vadd.f32 %v1948_v53, %v1947_v4 }
 0x24d   : > { %v1986_v35 = vsel %vm790_vm5, %v1925_v12, 0.0 }
 0x24e   : > { %v1951_v62 = vadd.f32 %v1950_v24, %v1949_v49  ;;  %v1923_v49 = vmul.f32 %v1891_v28, %v1891_v28  ;;  %v1924_v24 = vmul.f32 %v1892_v9, %v1892_v9 }
 0x250   : > { %v1953_v27 = vadd.f32 %v1952_v10, %v1951_v62  ;;  %v1980_v62 = vsel %vm790_vm5, %v1922_v11, 0.0  ;;  %v1982_v5 = vsel %vm790_vm5, %v1923_v49, 0.0  ;;  %v1984_v22 = vsel %vm790_vm5, %v1924_v24, 0.0 }
 0x252   : > { %v1955_v13 = vadd.f32 %v1954_v57, %v1953_v27  ;;  %v1926_v27 = vmul.f32 %v1894_v51, %v1894_v51 }
 0x254   : > { %v1957_v6 = vadd.f32 %v1956_v61, %v1955_v13  ;;  %v1988_v13 = vsel %vm790_vm5, %v1926_v27, 0.0 }
 0x256   : > { %v1959_v20 = vadd.f32 %v1958_v43, %v1957_v6 }
 0x258   : > { %v1961_v46 = vadd.f32 %v1960_v38, %v1959_v20 }
 0x25a   : > { %v1963_v56 = vadd.f32 %v1962_v40, %v1961_v46 }
 0x25c   : > { %v1965_v23 = vadd.f32 %v1964_v31, %v1963_v56 }
 0x25e   : > { %v1967_v33 = vadd.f32 %v1966_v37, %v1965_v23 }
 0x260   : > { %v1969_v18 = vadd.f32 %v1968_v30, %v1967_v33 }
 0x262   : > { %v1971_v48 = vadd.f32 %v1970_v60, %v1969_v18 }
 0x264   : > { %v1973_v0 = vadd.f32 %v1972_v8, %v1971_v48 }
 0x266   : > { %v1975_v4 = vadd.f32 %v1974_v29, %v1973_v0 }
 0x268   : > { %v1977_v53 = vadd.f32 %v1976_v34, %v1975_v4 }
 0x26a   : > { %v1979_v39 = vadd.f32 %v1978_v44, %v1977_v53 }
 0x26c   : > { %v1981_v2 = vadd.f32 %v1980_v62, %v1979_v39 }
 0x26e   : > { %v1983_v10 = vadd.f32 %v1982_v5, %v1981_v2 }
 0x270   : > { %v1985_v17 = vadd.f32 %v1984_v22, %v1983_v10 }
 0x272   : > { %v1987_v57 = vadd.f32 %v1986_v35, %v1985_v17 }
 0x274   : > { %v1989_v47 = vadd.f32 %v1988_v13, %v1987_v57 }
 0x276   : > { %v1990_v54 = vrot.slane %v1989_v47, 4 }
 0x278   : > { %v1991_v16 = vadd.f32 %v1990_v54, %v1989_v47 }
 0x27a   : > { %v1992_v21 = vrot.slane %v1991_v16, 2 }
 0x27c   : > { %v1993_v61 = vadd.f32 %v1992_v21, %v1991_v16 }
 0x27e   : > { %v1994_v6 = vrot.slane %v1993_v61, 1 }
 0x280   : > { %v1995_v36 = vadd.f32 %v1994_v6, %v1993_v61 }
 0x282   : > { %v1996_v14 = vsel %vm351_vm0, %v3952_v50, %v1995_v36 }
 0x283   : > { %1997 = vst.msk [vmem:[%s255_s18] sm:$0x3] %vm995_vm7, %v1996_v14 }
 0x284   : > { %2595 = shalt.err (!%p2592_p12)
}
 0x285   : > { %2323 = dma.vmem_to_hbm [thread:$0]  (%p2712_p5), %s2062_s19, 32, %s2064_s20, %s2036_s25  }
 0x286 PF: > { %p2334_p13 = scmp.ge.s32.totalorder %s2634_s24, 2  ;;  %s2100_s12 = sand.u32 1, %s2622_s21  }
 0x287   : > { %s2101_s11 = scalar_lea.sflag [#allocation3], %s2100_s12 }
 0x288   : > { %p2328_p0 = pnand %p2334_p13, %p2716_p6 }
 0x28a   : > { %p2329_p1 = pneg %p2328_p0 }
 0x28c   : > { %2613 = dma.done.wait (%p2329_p1), %s2101_s11, 32  }
 0x28d   : > { %2615 = vsyncadd (%p2329_p1), %s2101_s11, 4294967264  ;;  %s2119_s17 = scalar_lea.sflag [#allocation5], %s2100_s12 }
 0x28e   : > { %2617 = dma.done.wait (%p2329_p1), %s2119_s17, 32  }
 0x28f   : > { %2619 = vsyncadd (%p2329_p1), %s2119_s17, 4294967264  ;;  %p20_p5 = scmp.ge.s32.totalorder %s2699_s27, 4   ;;  %s4139_s21 = smov %s2626_s22 }
 0x290   : > { %s4140_s22 = smov %s2630_s23  ;;  %s4141_s23 = smov %s2710_s30 }
 0x291   : > { %s4142_s24 = smov %s2699_s27  ;;  %22 = sbr.rel (!%p20_p5) target bundleno = 5 (0x5), region = 108 }
 0x296   :  { %2125 = vsyncpa [#allocation3], 1 }
 0x297   :  { %2127 = vsyncpa [#allocation3 + $0x1], 1 }
 0x298   :  { %2128 = vsyncpa [#allocation5], 1 }
 0x299   :  { %2130 = vsyncpa [#allocation5 + $0x1], 1 }

</bundles_post_ra>
